<compile_context>
chip_gen: v6e
topology: v6e:2x2x1
jax: 0.10.0
libtpu: 0.0.40
codegen_flags: <defaults>
</compile_context>

<pallas_src>
import functools

import numpy as np
import jax
import jax.numpy as jnp
from jax.experimental import pallas as pl
from jax.experimental.pallas import tpu as pltpu


# ----------------------------------------------------------------------------
# Kernel 1: LSTM recurrence (grid over time, h/c carried in VMEM scratch)
# ----------------------------------------------------------------------------

def _lstm_step_kernel(x_ref, wih_ref, whh_ref, b_ref, h_out_ref, h_scr, c_scr, *, hidden):
    t = pl.program_id(0)

    @pl.when(t == 0)
    def _():
        h_scr[...] = jnp.zeros_like(h_scr)
        c_scr[...] = jnp.zeros_like(c_scr)

    x = x_ref[0]                                    # (N, IN)
    h_prev = h_scr[...]                             # (N, H)
    gates = (jnp.dot(x, wih_ref[...], preferred_element_type=jnp.float32)
             + jnp.dot(h_prev, whh_ref[...], preferred_element_type=jnp.float32)
             + b_ref[...])                          # (N, 4H), lane-dense (4H = 128)

    H = hidden
    def _sigmoid(v):
        return 1.0 / (1.0 + jnp.exp(-v))

    i = _sigmoid(gates[:, 0 * H:1 * H])             # PyTorch gate order: i, f, g, o
    f = _sigmoid(gates[:, 1 * H:2 * H])
    g = jnp.tanh(gates[:, 2 * H:3 * H])
    o = _sigmoid(gates[:, 3 * H:4 * H])

    c_new = f * c_scr[...] + i * g
    h_new = o * jnp.tanh(c_new)
    c_scr[...] = c_new
    h_scr[...] = h_new
    h_out_ref[0] = h_new.astype(h_out_ref.dtype)


def lstm_forward(dec_inp, w_ih, w_hh, b):
    """dec_inp: (T, N, IN);  w_ih: (IN, 4H);  w_hh: (H, 4H);  b: (1, 4H) (= b_ih + b_hh)."""
    T, N, IN = dec_inp.shape
    H = w_hh.shape[0]
    return pl.pallas_call(
        functools.partial(_lstm_step_kernel, hidden=H),
        out_shape=jax.ShapeDtypeStruct((T, N, H), dec_inp.dtype),
        grid=(T,),
        in_specs=[pl.BlockSpec((1, N, IN), lambda t: (t, 0, 0)),
                  pl.BlockSpec((IN, 4 * H), lambda t: (0, 0)),   # resident across steps
                  pl.BlockSpec((H, 4 * H), lambda t: (0, 0)),    # resident across steps
                  pl.BlockSpec((1, 4 * H), lambda t: (0, 0))],   # resident across steps
        out_specs=pl.BlockSpec((1, N, H), lambda t: (t, 0, 0)),
        scratch_shapes=[pltpu.VMEM((N, H), jnp.float32),         # h carry
                        pltpu.VMEM((N, H), jnp.float32)],        # c carry
        compiler_params=pltpu.CompilerParams(
            dimension_semantics=("arbitrary",)),                 # sequential recurrence
    )(dec_inp, w_ih, w_hh, b)


# ----------------------------------------------------------------------------
# Kernel 2: fused head  (rnn_fc + implicit concat + final_layer, padded lane-dense out)
# ----------------------------------------------------------------------------

def _head_kernel(hid_ref, enc_ref, wfc_ref, bfc_ref, wfe_ref, wfh_ref, bf_ref, o_ref):
    fc = (jnp.dot(hid_ref[...], wfc_ref[...], preferred_element_type=jnp.float32)
          + bfc_ref[...])                                        # rnn_fc output, stays in VMEM
    out = (jnp.dot(enc_ref[...], wfe_ref[...], preferred_element_type=jnp.float32)
           + jnp.dot(fc, wfh_ref[...], preferred_element_type=jnp.float32)
           + bf_ref[...])                                        # == final_layer(cat([enc, fc]))
    o_ref[...] = out.astype(o_ref.dtype)


def head_forward(hidden_flat, enc_out, w_fc, b_fc, w_fin_enc, w_fin_hid, b_fin):
    T, K = hidden_flat.shape
    F = w_fc.shape[1]            # 1000
    Cp = w_fin_enc.shape[1]      # class dim padded to 128 (lane-dense store)
    tm = T if T <= 256 else 256  # row tile (multiple of 8 / full extent at small scale)
    grid = (pl.cdiv(T, tm),)
    return pl.pallas_call(
        _head_kernel,
        out_shape=jax.ShapeDtypeStruct((T, Cp), hidden_flat.dtype),
        grid=grid,
        in_specs=[pl.BlockSpec((tm, K), lambda i: (i, 0)),
                  pl.BlockSpec((tm, F), lambda i: (i, 0)),
                  pl.BlockSpec((K, F), lambda i: (0, 0)),
                  pl.BlockSpec((1, F), lambda i: (0, 0)),
                  pl.BlockSpec((F, Cp), lambda i: (0, 0)),
                  pl.BlockSpec((F, Cp), lambda i: (0, 0)),
                  pl.BlockSpec((1, Cp), lambda i: (0, 0))],
        out_specs=pl.BlockSpec((tm, Cp), lambda i: (i, 0)),
        compiler_params=pltpu.CompilerParams(
            dimension_semantics=("parallel",)),
    )(hidden_flat, enc_out, w_fc, b_fc, w_fin_enc, w_fin_hid, b_fin)


# ----------------------------------------------------------------------------
# Forward pass
# ----------------------------------------------------------------------------

def rnn_decoder_forward(params, enc_out, dec_inp, *, class_n):
    hidden = lstm_forward(dec_inp, params["w_ih"], params["w_hh"], params["b_lstm"])
    T = hidden.shape[0]
    hidden_flat = hidden.reshape(T, -1)              # == hidden.view(B, -1)
    out_padded = head_forward(hidden_flat, enc_out,
                              params["rnn_fc_w"], params["rnn_fc_b"],
                              params["final_w_enc"], params["final_w_hid"],
                              params["final_b"])
    # Dropout: inference-mode identity.
    return out_padded[:, :class_n]                   # strip lane-padding


# ----------------------------------------------------------------------------
# Deterministic parameter construction (PyTorch-style uniform init)
# ----------------------------------------------------------------------------

def init_params(key, *, max_len, class_n, embedding_dim, num_features, pad_classes=128):
    ks = jax.random.split(key, 10)
    H, IN = embedding_dim, max_len

    def u(k, shape, scale):
        return jax.random.uniform(k, shape, jnp.float32, -scale, scale)

    s_lstm = 1.0 / np.sqrt(H)
    w_ih = u(ks[0], (IN, 4 * H), s_lstm)             # transposed vs torch (IN, 4H)
    w_hh = u(ks[1], (H, 4 * H), s_lstm)
    b_lstm = u(ks[2], (1, 4 * H), s_lstm) + u(ks[3], (1, 4 * H), s_lstm)   # b_ih + b_hh

    K = num_features * H
    rnn_fc_w = u(ks[4], (K, 1000), 1.0 / np.sqrt(K))
    rnn_fc_b = u(ks[5], (1, 1000), 1.0 / np.sqrt(K))

    Cp = max(pad_classes, class_n)
    s_fin = 1.0 / np.sqrt(2000.0)
    w_full = u(ks[6], (2000, class_n), s_fin)        # final_layer weight (2000 -> class_n)
    b_fin = u(ks[7], (1, class_n), s_fin)
    # Split final weight (rows 0:1000 -> enc_out, rows 1000:2000 -> rnn_fc output) and
    # zero-pad the class dim to Cp=128 for lane-dense stores.
    w_enc = jnp.zeros((1000, Cp), jnp.float32).at[:, :class_n].set(w_full[:1000])
    w_hid = jnp.zeros((1000, Cp), jnp.float32).at[:, :class_n].set(w_full[1000:])
    b_pad = jnp.zeros((1, Cp), jnp.float32).at[:, :class_n].set(b_fin)

    return dict(w_ih=w_ih, w_hh=w_hh, b_lstm=b_lstm,
                rnn_fc_w=rnn_fc_w, rnn_fc_b=rnn_fc_b,
                final_w_enc=w_enc, final_w_hid=w_hid, final_b=b_pad)


# ----------------------------------------------------------------------------
# Main
# ----------------------------------------------------------------------------

if __name__ == "__main__":
    MAX_LEN = 16          # LSTM input_size
    EMBED = 32            # LSTM hidden_size (embedding_dim)
    NUM_FEATURES = 8      # dim 1 of dec_inp (LSTM "batch")
    CLASS_N = 10
    BATCH = 8             # dim 0 of dec_inp / enc_out (LSTM time axis)

    key = jax.random.PRNGKey(0)
    kp, ke, kd = jax.random.split(key, 3)
    params = init_params(kp, max_len=MAX_LEN, class_n=CLASS_N,
                         embedding_dim=EMBED, num_features=NUM_FEATURES)

    enc_out = jax.random.normal(ke, (BATCH, 1000), jnp.float32)
    dec_inp = jax.random.normal(kd, (BATCH, NUM_FEATURES, MAX_LEN), jnp.float32)

    fwd = jax.jit(lambda p, e, d: rnn_decoder_forward(p, e, d, class_n=CLASS_N))
    out = jax.block_until_ready(fwd(params, enc_out, dec_inp))

    assert out.shape == (BATCH, CLASS_N), out.shape
    assert bool(jnp.all(jnp.isfinite(out)))
    print("KERNEL_OK")
</pallas_src>

<mosaic_0001>
module attributes {stable_mosaic.version = 11 : i64} {
  func.func @_lstm_step_kernel(%arg0: i32, %arg1: memref<1x8x16xf32, #tpu.memory_space<vmem>>, %arg2: memref<16x128xf32, #tpu.memory_space<vmem>>, %arg3: memref<32x128xf32, #tpu.memory_space<vmem>>, %arg4: memref<1x128xf32, #tpu.memory_space<vmem>>, %arg5: memref<1x8x32xf32, #tpu.memory_space<vmem>>, %arg6: memref<8x32xf32, #tpu.memory_space<vmem>>, %arg7: memref<8x32xf32, #tpu.memory_space<vmem>>) attributes {dimension_semantics = [#tpu.dimension_semantics<arbitrary>], iteration_bounds = array<i64: 8>, scalar_prefetch = 0 : i64, scratch_operands = 2 : i64, tpu.core_type = #tpu.core_type<tc>, window_params = [{transform_indices = @transform_0, window_bounds = array<i64: 1, 8, 16>}, {pipeline_mode = #tpu.pipeline_mode<synchronous>, transform_indices = @transform_1, window_bounds = array<i64: 16, 128>}, {pipeline_mode = #tpu.pipeline_mode<synchronous>, transform_indices = @transform_2, window_bounds = array<i64: 32, 128>}, {pipeline_mode = #tpu.pipeline_mode<synchronous>, transform_indices = @transform_3, window_bounds = array<i64: 1, 128>}, {transform_indices = @transform_4, window_bounds = array<i64: 1, 8, 32>}]} {
    %c0_i32 = arith.constant 0 : i32
    %0 = arith.cmpi eq, %arg0, %c0_i32 : i32
    %1 = arith.extui %0 : i1 to i32
    %c0_i32_0 = arith.constant 0 : i32
    %2 = arith.cmpi ne, %1, %c0_i32_0 : i32
    scf.if %2 {
      %cst_30 = arith.constant 0.000000e+00 : f32
      %51 = vector.broadcast %cst_30 : f32 to vector<8x32xf32>
      %c0_31 = arith.constant 0 : index
      %c0_32 = arith.constant 0 : index
      %52 = vector.load %arg6[%c0_31, %c0_32] : memref<8x32xf32, #tpu.memory_space<vmem>>, vector<8x32xf32>
      tpu.vector_store %arg6[%c0_31, %c0_32], %51 {strides = array<i32>} : memref<8x32xf32, #tpu.memory_space<vmem>>, vector<8x32xf32>,
      %cst_33 = arith.constant 0.000000e+00 : f32
      %53 = vector.broadcast %cst_33 : f32 to vector<8x32xf32>
      %c0_34 = arith.constant 0 : index
      %c0_35 = arith.constant 0 : index
      %54 = vector.load %arg7[%c0_34, %c0_35] : memref<8x32xf32, #tpu.memory_space<vmem>>, vector<8x32xf32>
      tpu.vector_store %arg7[%c0_34, %c0_35], %53 {strides = array<i32>} : memref<8x32xf32, #tpu.memory_space<vmem>>, vector<8x32xf32>,
    } else {
    }
    %c0 = arith.constant 0 : index
    %c0_1 = arith.constant 0 : index
    %c0_2 = arith.constant 0 : index
    %3 = vector.load %arg1[%c0, %c0_1, %c0_2] : memref<1x8x16xf32, #tpu.memory_space<vmem>>, vector<1x8x16xf32>
    %4 = vector.shape_cast %3 : vector<1x8x16xf32> to vector<8x16xf32>
    %c0_3 = arith.constant 0 : index
    %c0_4 = arith.constant 0 : index
    %5 = vector.load %arg6[%c0_3, %c0_4] : memref<8x32xf32, #tpu.memory_space<vmem>>, vector<8x32xf32>
    %c0_5 = arith.constant 0 : index
    %c0_6 = arith.constant 0 : index
    %6 = vector.load %arg2[%c0_5, %c0_6] : memref<16x128xf32, #tpu.memory_space<vmem>>, vector<16x128xf32>
    %cst = arith.constant dense<0.000000e+00> : vector<8x128xf32>
    %7 = tpu.matmul %4, %6, %cst {dimension_numbers = #tpu.dot_dimension_numbers<[1], [0], [0], [1], [0, 0, 1, 1], [], []>} : vector<8x16xf32>, vector<16x128xf32>, vector<8x128xf32> -> vector<8x128xf32>
    %c0_7 = arith.constant 0 : index
    %c0_8 = arith.constant 0 : index
    %8 = vector.load %arg3[%c0_7, %c0_8] : memref<32x128xf32, #tpu.memory_space<vmem>>, vector<32x128xf32>
    %cst_9 = arith.constant dense<0.000000e+00> : vector<8x128xf32>
    %9 = tpu.matmul %5, %8, %cst_9 {dimension_numbers = #tpu.dot_dimension_numbers<[1], [0], [0], [1], [0, 0, 1, 1], [], []>} : vector<8x32xf32>, vector<32x128xf32>, vector<8x128xf32> -> vector<8x128xf32>
    %10 = arith.addf %7, %9 : vector<8x128xf32>
    %c0_10 = arith.constant 0 : index
    %c0_11 = arith.constant 0 : index
    %11 = vector.load %arg4[%c0_10, %c0_11] : memref<1x128xf32, #tpu.memory_space<vmem>>, vector<1x128xf32>
    %12 = vector.broadcast %11 : vector<1x128xf32> to vector<8x128xf32>
    %13 = arith.addf %10, %12 : vector<8x128xf32>
    %14 = vector.extract_strided_slice %13 {offsets = [0, 0], sizes = [8, 32], strides = [1, 1]} : vector<8x128xf32> to vector<8x32xf32>
    %cst_12 = arith.constant 0.000000e+00 : f32
    %15 = vector.broadcast %cst_12 : f32 to vector<8x32xf32>
    %16 = arith.subf %15, %14 : vector<8x32xf32>
    %17 = math.exp %16 : vector<8x32xf32>
    %cst_13 = arith.constant 1.000000e+00 : f32
    %18 = vector.broadcast %cst_13 : f32 to vector<8x32xf32>
    %19 = arith.addf %18, %17 : vector<8x32xf32>
    %cst_14 = arith.constant 1.000000e+00 : f32
    %20 = vector.broadcast %cst_14 : f32 to vector<8x32xf32>
    %21 = arith.divf %20, %19 : vector<8x32xf32>
    %22 = vector.extract_strided_slice %13 {offsets = [0, 32], sizes = [8, 32], strides = [1, 1]} : vector<8x128xf32> to vector<8x32xf32>
    %cst_15 = arith.constant 0.000000e+00 : f32
    %23 = vector.broadcast %cst_15 : f32 to vector<8x32xf32>
    %24 = arith.subf %23, %22 : vector<8x32xf32>
    %25 = math.exp %24 : vector<8x32xf32>
    %cst_16 = arith.constant 1.000000e+00 : f32
    %26 = vector.broadcast %cst_16 : f32 to vector<8x32xf32>
    %27 = arith.addf %26, %25 : vector<8x32xf32>
    %cst_17 = arith.constant 1.000000e+00 : f32
    %28 = vector.broadcast %cst_17 : f32 to vector<8x32xf32>
    %29 = arith.divf %28, %27 : vector<8x32xf32>
    %30 = vector.extract_strided_slice %13 {offsets = [0, 64], sizes = [8, 32], strides = [1, 1]} : vector<8x128xf32> to vector<8x32xf32>
    %31 = math.tanh %30 : vector<8x32xf32>
    %32 = vector.extract_strided_slice %13 {offsets = [0, 96], sizes = [8, 32], strides = [1, 1]} : vector<8x128xf32> to vector<8x32xf32>
    %cst_18 = arith.constant 0.000000e+00 : f32
    %33 = vector.broadcast %cst_18 : f32 to vector<8x32xf32>
    %34 = arith.subf %33, %32 : vector<8x32xf32>
    %35 = math.exp %34 : vector<8x32xf32>
    %cst_19 = arith.constant 1.000000e+00 : f32
    %36 = vector.broadcast %cst_19 : f32 to vector<8x32xf32>
    %37 = arith.addf %36, %35 : vector<8x32xf32>
    %cst_20 = arith.constant 1.000000e+00 : f32
    %38 = vector.broadcast %cst_20 : f32 to vector<8x32xf32>
    %39 = arith.divf %38, %37 : vector<8x32xf32>
    %c0_21 = arith.constant 0 : index
    %c0_22 = arith.constant 0 : index
    %40 = vector.load %arg7[%c0_21, %c0_22] : memref<8x32xf32, #tpu.memory_space<vmem>>, vector<8x32xf32>
    %41 = arith.mulf %29, %40 : vector<8x32xf32>
    %42 = arith.mulf %21, %31 : vector<8x32xf32>
    %43 = arith.addf %41, %42 : vector<8x32xf32>
    %44 = math.tanh %43 : vector<8x32xf32>
    %45 = arith.mulf %39, %44 : vector<8x32xf32>
    %c0_23 = arith.constant 0 : index
    %c0_24 = arith.constant 0 : index
    %46 = vector.load %arg7[%c0_23, %c0_24] : memref<8x32xf32, #tpu.memory_space<vmem>>, vector<8x32xf32>
    tpu.vector_store %arg7[%c0_23, %c0_24], %43 {strides = array<i32>} : memref<8x32xf32, #tpu.memory_space<vmem>>, vector<8x32xf32>,
    %c0_25 = arith.constant 0 : index
    %c0_26 = arith.constant 0 : index
    %47 = vector.load %arg6[%c0_25, %c0_26] : memref<8x32xf32, #tpu.memory_space<vmem>>, vector<8x32xf32>
    tpu.vector_store %arg6[%c0_25, %c0_26], %45 {strides = array<i32>} : memref<8x32xf32, #tpu.memory_space<vmem>>, vector<8x32xf32>,
    %c0_27 = arith.constant 0 : index
    %c0_28 = arith.constant 0 : index
    %c0_29 = arith.constant 0 : index
    %48 = vector.load %arg5[%c0_27, %c0_28, %c0_29] : memref<1x8x32xf32, #tpu.memory_space<vmem>>, vector<1x8x32xf32>
    %49 = vector.shape_cast %48 : vector<1x8x32xf32> to vector<8x32xf32>
    %50 = vector.shape_cast %45 : vector<8x32xf32> to vector<1x8x32xf32>
    tpu.vector_store %arg5[%c0_27, %c0_28, %c0_29], %50 {strides = array<i32>} : memref<1x8x32xf32, #tpu.memory_space<vmem>>, vector<1x8x32xf32>,
    return
  }
  func.func @transform_0(%arg0: i32) -> (i32, i32, i32) {
    %c0_i32 = arith.constant 0 : i32
    %c0_i32_0 = arith.constant 0 : i32
    %c0_i32_1 = arith.constant 0 : i32
    return %arg0, %c0_i32, %c0_i32_0 : i32, i32, i32
  }
  func.func @transform_1(%arg0: i32) -> (i32, i32) {
    %c0_i32 = arith.constant 0 : i32
    %c0_i32_0 = arith.constant 0 : i32
    %c0_i32_1 = arith.constant 0 : i32
    return %c0_i32, %c0_i32_0 : i32, i32
  }
  func.func @transform_2(%arg0: i32) -> (i32, i32) {
    %c0_i32 = arith.constant 0 : i32
    %c0_i32_0 = arith.constant 0 : i32
    %c0_i32_1 = arith.constant 0 : i32
    return %c0_i32, %c0_i32_0 : i32, i32
  }
  func.func @transform_3(%arg0: i32) -> (i32, i32) {
    %c0_i32 = arith.constant 0 : i32
    %c0_i32_0 = arith.constant 0 : i32
    %c0_i32_1 = arith.constant 0 : i32
    return %c0_i32, %c0_i32_0 : i32, i32
  }
  func.func @transform_4(%arg0: i32) -> (i32, i32, i32) {
    %c0_i32 = arith.constant 0 : i32
    %c0_i32_0 = arith.constant 0 : i32
    %c0_i32_1 = arith.constant 0 : i32
    return %arg0, %c0_i32, %c0_i32_0 : i32, i32, i32
  }
}

module attributes {stable_mosaic.version = 11 : i64} {
  func.func @_head_kernel(%arg0: i32, %arg1: memref<8x256xf32, #tpu.memory_space<vmem>>, %arg2: memref<8x1000xf32, #tpu.memory_space<vmem>>, %arg3: memref<256x1000xf32, #tpu.memory_space<vmem>>, %arg4: memref<1x1000xf32, #tpu.memory_space<vmem>>, %arg5: memref<1000x128xf32, #tpu.memory_space<vmem>>, %arg6: memref<1000x128xf32, #tpu.memory_space<vmem>>, %arg7: memref<1x128xf32, #tpu.memory_space<vmem>>, %arg8: memref<8x128xf32, #tpu.memory_space<vmem>>) attributes {dimension_semantics = [#tpu.dimension_semantics<parallel>], iteration_bounds = array<i64: 1>, scalar_prefetch = 0 : i64, scratch_operands = 0 : i64, tpu.core_type = #tpu.core_type<tc>, window_params = [{transform_indices = @transform_0, window_bounds = array<i64: 8, 256>}, {transform_indices = @transform_1, window_bounds = array<i64: 8, 1000>}, {pipeline_mode = #tpu.pipeline_mode<synchronous>, transform_indices = @transform_2, window_bounds = array<i64: 256, 1000>}, {pipeline_mode = #tpu.pipeline_mode<synchronous>, transform_indices = @transform_3, window_bounds = array<i64: 1, 1000>}, {pipeline_mode = #tpu.pipeline_mode<synchronous>, transform_indices = @transform_4, window_bounds = array<i64: 1000, 128>}, {pipeline_mode = #tpu.pipeline_mode<synchronous>, transform_indices = @transform_5, window_bounds = array<i64: 1000, 128>}, {pipeline_mode = #tpu.pipeline_mode<synchronous>, transform_indices = @transform_6, window_bounds = array<i64: 1, 128>}, {transform_indices = @transform_7, window_bounds = array<i64: 8, 128>}]} {
    %c0 = arith.constant 0 : index
    %c0_0 = arith.constant 0 : index
    %0 = vector.load %arg1[%c0, %c0_0] : memref<8x256xf32, #tpu.memory_space<vmem>>, vector<8x256xf32>
    %c0_1 = arith.constant 0 : index
    %c0_2 = arith.constant 0 : index
    %1 = vector.load %arg3[%c0_1, %c0_2] : memref<256x1000xf32, #tpu.memory_space<vmem>>, vector<256x1000xf32>
    %cst = arith.constant dense<0.000000e+00> : vector<8x1000xf32>
    %2 = tpu.matmul %0, %1, %cst {dimension_numbers = #tpu.dot_dimension_numbers<[1], [0], [0], [1], [0, 0, 1, 1], [], []>} : vector<8x256xf32>, vector<256x1000xf32>, vector<8x1000xf32> -> vector<8x1000xf32>
    %c0_3 = arith.constant 0 : index
    %c0_4 = arith.constant 0 : index
    %3 = vector.load %arg4[%c0_3, %c0_4] : memref<1x1000xf32, #tpu.memory_space<vmem>>, vector<1x1000xf32>
    %4 = vector.broadcast %3 : vector<1x1000xf32> to vector<8x1000xf32>
    %5 = arith.addf %2, %4 : vector<8x1000xf32>
    %c0_5 = arith.constant 0 : index
    %c0_6 = arith.constant 0 : index
    %6 = vector.load %arg2[%c0_5, %c0_6] : memref<8x1000xf32, #tpu.memory_space<vmem>>, vector<8x1000xf32>
    %c0_7 = arith.constant 0 : index
    %c0_8 = arith.constant 0 : index
    %7 = vector.load %arg5[%c0_7, %c0_8] : memref<1000x128xf32, #tpu.memory_space<vmem>>, vector<1000x128xf32>
    %cst_9 = arith.constant dense<0.000000e+00> : vector<8x128xf32>
    %8 = tpu.matmul %6, %7, %cst_9 {dimension_numbers = #tpu.dot_dimension_numbers<[1], [0], [0], [1], [0, 0, 1, 1], [], []>} : vector<8x1000xf32>, vector<1000x128xf32>, vector<8x128xf32> -> vector<8x128xf32>
    %c0_10 = arith.constant 0 : index
    %c0_11 = arith.constant 0 : index
    %9 = vector.load %arg6[%c0_10, %c0_11] : memref<1000x128xf32, #tpu.memory_space<vmem>>, vector<1000x128xf32>
    %cst_12 = arith.constant dense<0.000000e+00> : vector<8x128xf32>
    %10 = tpu.matmul %5, %9, %cst_12 {dimension_numbers = #tpu.dot_dimension_numbers<[1], [0], [0], [1], [0, 0, 1, 1], [], []>} : vector<8x1000xf32>, vector<1000x128xf32>, vector<8x128xf32> -> vector<8x128xf32>
    %11 = arith.addf %8, %10 : vector<8x128xf32>
    %c0_13 = arith.constant 0 : index
    %c0_14 = arith.constant 0 : index
    %12 = vector.load %arg7[%c0_13, %c0_14] : memref<1x128xf32, #tpu.memory_space<vmem>>, vector<1x128xf32>
    %13 = vector.broadcast %12 : vector<1x128xf32> to vector<8x128xf32>
    %14 = arith.addf %11, %13 : vector<8x128xf32>
    %c0_15 = arith.constant 0 : index
    %c0_16 = arith.constant 0 : index
    %15 = vector.load %arg8[%c0_15, %c0_16] : memref<8x128xf32, #tpu.memory_space<vmem>>, vector<8x128xf32>
    tpu.vector_store %arg8[%c0_15, %c0_16], %14 {strides = array<i32>} : memref<8x128xf32, #tpu.memory_space<vmem>>, vector<8x128xf32>,
    return
  }
  func.func @transform_0(%arg0: i32) -> (i32, i32) {
    %c0_i32 = arith.constant 0 : i32
    %c0_i32_0 = arith.constant 0 : i32
    return %arg0, %c0_i32 : i32, i32
  }
  func.func @transform_1(%arg0: i32) -> (i32, i32) {
    %c0_i32 = arith.constant 0 : i32
    %c0_i32_0 = arith.constant 0 : i32
    return %arg0, %c0_i32 : i32, i32
  }
  func.func @transform_2(%arg0: i32) -> (i32, i32) {
    %c0_i32 = arith.constant 0 : i32
    %c0_i32_0 = arith.constant 0 : i32
    %c0_i32_1 = arith.constant 0 : i32
    return %c0_i32, %c0_i32_0 : i32, i32
  }
  func.func @transform_3(%arg0: i32) -> (i32, i32) {
    %c0_i32 = arith.constant 0 : i32
    %c0_i32_0 = arith.constant 0 : i32
    %c0_i32_1 = arith.constant 0 : i32
    return %c0_i32, %c0_i32_0 : i32, i32
  }
  func.func @transform_4(%arg0: i32) -> (i32, i32) {
    %c0_i32 = arith.constant 0 : i32
    %c0_i32_0 = arith.constant 0 : i32
    %c0_i32_1 = arith.constant 0 : i32
    return %c0_i32, %c0_i32_0 : i32, i32
  }
  func.func @transform_5(%arg0: i32) -> (i32, i32) {
    %c0_i32 = arith.constant 0 : i32
    %c0_i32_0 = arith.constant 0 : i32
    %c0_i32_1 = arith.constant 0 : i32
    return %c0_i32, %c0_i32_0 : i32, i32
  }
  func.func @transform_6(%arg0: i32) -> (i32, i32) {
    %c0_i32 = arith.constant 0 : i32
    %c0_i32_0 = arith.constant 0 : i32
    %c0_i32_1 = arith.constant 0 : i32
    return %c0_i32, %c0_i32_0 : i32, i32
  }
  func.func @transform_7(%arg0: i32) -> (i32, i32) {
    %c0_i32 = arith.constant 0 : i32
    %c0_i32_0 = arith.constant 0 : i32
    return %arg0, %c0_i32 : i32, i32
  }
}

</mosaic_0001>

<bundles_post_ra>
// kernel: _lambda_.2
= control target key start
LH: loop header
LB: loop body
LE: loop exit
PB: predicated region body
PF: predicated region fallthrough
CT: control target
= control target key end

     0   :  { %9 = vsyncpa [#allocation5], 0  ;;  %s1032_s0 = inlined_call_operand.hbm [shape: f32[8,8,16], index: 0, kind: input, shape index: {}]   ;;  %s1033_s1 = inlined_call_operand.hbm [shape: f32[16,128], index: 1, kind: input, shape index: {}]   ;;  %s1034_s2 = inlined_call_operand.hbm [shape: f32[32,128], index: 2, kind: input, shape index: {}]   ;;  %s1035_s3 = inlined_call_operand.hbm [shape: f32[1,128], index: 3, kind: input, shape index: {}]   ;;  %s1036_s4 = inlined_call_operand.vmem [shape: f32[8,8,32], index: 4, kind: output, shape index: {}]  }
   0x1   :  { %11 = vsyncpa [#allocation5 + $0x1], 0 }
   0x2   :  { %12 = vsyncpa [#allocation7], 0 }
   0x3   :  { %13 = vsyncpa [#allocation10], 0  ;;  %s879_s15 = smov 0   ;;  %s881_s16 = smov 0  }
   0x4   :  { %s883_s17 = smov 0   ;;  %s885_s18 = smov 0  }
   0x5 LB: > { %s898_s19 = sadd.s32 4294967295, %s840_s18   ;;  %p39_p0 = scmp.ne.s32.totalorder %s832_s16, %s828_s15  ;;  %s840_s18 = sphi %s885_s18, %s1055_s18   ;;  %s836_s17 = sphi %s883_s17, %s1054_s17   ;;  %s832_s16 = sphi %s881_s16, %s1053_s16   ;;  %s828_s15 = sphi %s879_s15, %s1052_s15  }
   0x6   : > { %p1037_p1 = scmp.eq.s32.totalorder %s898_s19, 0  ;;  %p561_p2 = scmp.ge.s32.totalorder %s840_s18, 1 }
   0x7   : > { %p139_p3 = scmp.lt.s32.totalorder %s840_s18, 9  ;;  %s842_s22 = smov [#allocation6]  }
   0x8   : > { %p907_p5 = por %p1037_p1, %p39_p0  ;;  %s151_s23 = sshll.u32 %s842_s22, 4  ;;  %s152_s23 = int_to_ptr.vmem [resolvable:$true] %s151_s23 }
   0x9   : > { %p911_p6 = pnand %p561_p2, %p139_p3  ;;  %s843_s25 = smov [#allocation8]  }
   0xa   : > { %s1040_s20 = scalar_select %p907_p5, 1, 0 }
   0xb   : > { %s1041_s21 = scalar_select %p911_p6, 1, 0 }
   0xc   : > { %p620_p7 = pneg %p911_p6  ;;  %s164_s26 = sshll.u32 %s843_s25, 4  ;;  %s165_s26 = int_to_ptr.vmem [resolvable:$true] %s164_s26 }
   0xd   : > { %s844_s27 = smov [#allocation9]   ;;  %s703_s29 = scalar_lea.vmem %s152_s23, 256 }
   0xe   : > { %p919_p8 = pnand %p620_p7, %p1037_p1  ;;  %s178_s28 = sshll.u32 %s844_s27, 4  ;;  %s179_s28 = int_to_ptr.vmem [resolvable:$true] %s178_s28 }
   0xf   : > { %p704_p10 = scmp.ne.s32.totalorder %s152_s23, %s703_s29  ;;  %p711_p13 = scmp.lt.s32.totalorder %s152_s23, %s152_s23 }
  0x10   : > { %p694_p9 = pneg %p919_p8  ;;  %p712_p0 = scmp.lt.s32.totalorder %s703_s29, %s703_s29 }
  0x12   : > { %p706_p11 = pnand %p704_p10, %p694_p9  ;;  %p713_p2 = por %p712_p0, %p711_p13 }
  0x14   : > { %p707_p12 = pneg %p706_p11 }
  0x16   : > { %p714_p3 = pnand %p713_p2, %p707_p12 }
  0x18   : > { %717 = shalt.err (!%p714_p3)
}
  0x19   : > { %s845_s30 = smov 128   ;;  %s846_s5 = smov 8  }
  0x1a   : > { %623 = dma.hbm_to_vmem [thread:$0]  (!%p919_p8), %s1033_s1, 256, %s152_s23, [#allocation7], %s845_s30, %s845_s30, %s846_s5  }
  0x1b   : > { %s729_s8 = scalar_lea.vmem %s165_s26, 512  ;;  %p737_p4 = scmp.lt.s32.totalorder %s165_s26, %s165_s26 }
  0x1c   : > { %p730_p7 = scmp.ne.s32.totalorder %s165_s26, %s729_s8  ;;  %p738_p1 = scmp.lt.s32.totalorder %s729_s8, %s729_s8 }
  0x1e   : > { %p732_p10 = pnand %p730_p7, %p694_p9  ;;  %p739_p13 = por %p738_p1, %p737_p4 }
  0x20   : > { %p733_p11 = pneg %p732_p10 }
  0x22   : > { %p740_p12 = pnand %p739_p13, %p733_p11 }
  0x24   : > { %743 = shalt.err (!%p740_p12)
}
  0x25   : > { %626 = dma.hbm_to_vmem [thread:$0]  (!%p919_p8), %s1034_s2, 512, %s165_s26, [#allocation7], %s845_s30, %s845_s30, %s846_s5  }
  0x26   : > { %s755_s11 = scalar_lea.vmem %s179_s28, 16  ;;  %s762_s12 = scalar_lea.vmem %s179_s28, 32 }
  0x27   : > { %p756_p0 = scmp.ne.s32.totalorder %s179_s28, %s755_s11  ;;  %p763_p7 = scmp.lt.s32.totalorder %s179_s28, %s179_s28 }
  0x28   : > { %p764_p10 = scmp.lt.s32.totalorder %s762_s12, %s755_s11 }
  0x29   : > { %p758_p2 = pnand %p756_p0, %p694_p9 }
  0x2a   : > { %p765_p1 = por %p764_p10, %p763_p7 }
  0x2b   : > { %p759_p3 = pneg %p758_p2 }
  0x2d   : > { %p766_p4 = pnand %p765_p1, %p759_p3 }
  0x2f   : > { %769 = shalt.err (!%p766_p4)
}
  0x30   : > { %629 = dma.hbm_to_vmem [thread:$0]  (!%p919_p8), %s1035_s3, 16, %s179_s28, [#allocation10]  }
  0x31   : > { %s950_s15 = sadd.s32 1, %s840_s18   ;;  %s26_s23 = sadd.s32 1, %s836_s17 }
  0x32   : > { %s23_s22 = ssub.s32 %s840_s18, %s950_s15  ;;  %p33_p11 = scmp.ne.s32.totalorder %s836_s17, %s832_s16 }
  0x33   : > { %p24_p9 = scmp.eq.s32.totalorder %s23_s22, 0  ;;  %p34_p13 = scmp.eq.s32.totalorder %s840_s18, 0 }
  0x34   : > { %p637_p12 = scmp.lt.s32.totalorder %s840_s18, 8  ;;  %s189_s25 = sand.u32 1, %s836_s17  }
  0x35   : > { %s960_s24 = scalar_select %p24_p9, %s836_s17, %s26_s23  }
  0x36   : > { %p35_p0 = por %p34_p13, %p33_p11  ;;  %s566_s26 = sshll.u32 %s189_s25, 3 }
  0x37   : > { %s567_s27 = sshll.u32 %s840_s18, 7  ;;  %s193_s28 = scalar_lea.vmem [#allocation4], %s566_s26 }
  0x38   : > { %s967_s5 = scalar_lea.hbm %s1032_s0, %s567_s27  ;;  %s200_s6 = sshll.u32 %s193_s28, 4  ;;  %s201_s6 = int_to_ptr.vmem [resolvable:$true] %s200_s6 }
  0x39   : > { %p969_p8 = pnand %p637_p12, %p35_p0  ;;  %s190_s8 = scalar_lea.sflag [#allocation5], %s189_s25 }
  0x3a   : > { %s770_s9 = scalar_lea.hbm %s967_s5, 128  ;;  %s775_s11 = scalar_lea.hbm %s1032_s0, 1024 }
  0x3b   : > { %p771_p2 = scmp.ne.s32.totalorder %s967_s5, %s770_s9  ;;  %p772_p3 = pneg %p969_p8 }
  0x3c   : > { %p776_p1 = scmp.lt.s32.totalorder %s967_s5, %s1032_s0  ;;  %p777_p4 = scmp.lt.s32.totalorder %s775_s11, %s770_s9 }
  0x3d   : > { %p773_p7 = pnand %p772_p3, %p771_p2 }
  0x3e   : > { %p778_p9 = por %p777_p4, %p776_p1 }
  0x3f   : > { %p774_p10 = pneg %p773_p7 }
  0x41   : > { %p779_p11 = pnand %p778_p9, %p774_p10 }
  0x43   : > { %782 = shalt.err (!%p779_p11)
}
  0x44   : > { %s783_s14 = scalar_lea.vmem %s201_s6, 128  ;;  %s847_s22 = smov [#allocation4]  }
  0x45   : > { %p784_p13 = scmp.ne.s32.totalorder %s201_s6, %s783_s14  ;;  %s788_s23 = sshll.u32 %s847_s22, 4  ;;  %s789_s23 = int_to_ptr.vmem [resolvable:$false] %s788_s23 }
  0x46   : > { %s790_s25 = scalar_lea.vmem %s789_s23, 256  ;;  %p791_p2 = scmp.lt.s32.totalorder %s201_s6, %s789_s23 }
  0x47   : > { %p786_p12 = pnand %p784_p13, %p772_p3  ;;  %p792_p7 = scmp.lt.s32.totalorder %s790_s25, %s783_s14 }
  0x49   : > { %p787_p0 = pneg %p786_p12  ;;  %p793_p5 = por %p792_p7, %p791_p2 }
  0x4b   : > { %p794_p6 = pnand %p793_p5, %p787_p0 }
  0x4d   : > { %797 = shalt.err (!%p794_p6)
}
  0x4e   : > { %633 = dma.hbm_to_vmem [thread:$0]  (!%p969_p8), %s967_s5, 128, %s201_s6, %s190_s8  }
  0x4f   : > { %p1044_p10 = scmp.ne.s32.totalorder %s1041_s21, 0 }
  0x50   : > { %s211_s26 = sand.u32 (!%p1044_p10), 1, %s832_s16   ;;  %p1045_p3 = scmp.ne.s32.totalorder (!%p1044_p10), %s1040_s20, 0 }
  0x51   : > { %209 = sbr.rel (%p1044_p10) target bundleno = 804 (0x324), region = 36  ;;  %s990_s27 = sshll.u32 (!%p1044_p10), %s211_s26, 3 }
  0x52   : > { %s212_s29 = scalar_lea.sflag (!%p1044_p10), [#allocation5], %s211_s26  ;;  %s215_s30 = scalar_lea.vmem (!%p1044_p10), [#allocation4], %s990_s27 }
  0x56   : > { %815 = dma.done.wait (%p1045_p3), %s212_s29, 128  }
  0x57   : > { %817 = vsyncadd (%p1045_p3), %s212_s29, 4294967168  ;;  %p1046_p5 = scmp.eq.s32.totalorder %s898_s19, 0 }
  0x59   : > { %819 = dma.done.wait (%p1046_p5), [#allocation7], 768   ;;  %p1047_p6 = pmov %p1046_p5 }
  0x5a   : > { %p1048_p8 = pmov %p1046_p5 }
  0x5b   : > { %821 = vsyncadd (%p1047_p6), [#allocation7], 4294966528 }
  0x5c   : > { %823 = dma.done.wait (%p1048_p8), [#allocation10], 16   ;;  %p1049_p1 = pmov %p1046_p5 }
  0x5d   : > { %p251_p4 = scmp.lt.s32.totalorder %s898_s19, 7  ;;  %p1050_p9 = scmp.ne.s32.totalorder %s898_s19, 0 }
  0x5e   : > { %825 = vsyncadd (%p1049_p1), [#allocation10], 4294967280 }
  0x5f   : > { %s252_s21 = scalar_select %p251_p4, %s898_s19, 7 }
  0x60   : > { %258 = sbr.rel (%p1050_p9) target bundleno = 103 (0x67), region = 56 }
  0x61   : > { %s573_s5 = sshll.u32 %s252_s21, 3 }
  0x62   : > { %s1010_s6 = scalar_lea.vmem %s1036_s4, %s573_s5 }
  0x65   : > { %vm259_vm0 = vcmask 261120   ;;  %v848_v0 = vmov 0.0  }
  0x66   : > { %260 = vst.msk [vmem:[#allocation2] sm:$0xff] %vm259_vm0, %v848_v0  ;;  %261 = vst.msk [vmem:[#allocation3] sm:$0xff] %vm259_vm0, %v848_v0 }
  0x67 PF: > { %v269_v1 = vld [vmem:[#allocation8 + $0x18] sm:$0xff]  ;;  %v849_v3 = vmov 0.0   ;;  %v268_v4 = vld [vmem:[#allocation8 + $0x10] sm:$0xff]  ;;  %v267_v6 = vld [vmem:[#allocation8 + $0x8] sm:$0xff]  ;;  %vm344_vm1 = vcmask 130048   ;;  %vm850_vm2 = vmmov 0  }
  0x68   : > { %v265_v2 = vld [vmem:[#allocation6 + $0x8] sm:$0xff]  ;;  %588 = vmatprep.subr.mxu0 %v849_v3  ;;  %599 = vmatprep.subr.mxu1 %v849_v3  ;;  %v264_v5 = vld [vmem:[#allocation6] sm:$0xff]  ;;  %v262_v7 = vld [vmem:[%s215_s30] sm:$0xff]  ;;  %vm270_vm3 = vcmask 261120   ;;  %s851_s19 = smov 64   ;;  %s852_s7 = smov 32  }
  0x69   : > { %589 = vmatpush3.msra.mxu0 %v269_v1  ;;  %600 = vmatpush3.msra.mxu1 %v265_v2  ;;  %v266_v8 = vld [vmem:[#allocation8] sm:$0xff]  ;;  %s853_s8 = smov 96  }
  0x6a   : > { %590 = vmatprep.subr.mxu0 %v849_v3  ;;  %601 = vmatprep.subr.mxu1 %v849_v3  ;;  %v577_v13 = vld [vmem:[#allocation9] ss:$0 sm:$0xff] }
  0x6b   : > { %591 = vmatpush3.msra.mxu0 %v268_v4  ;;  %602 = vmatpush3.msra.mxu1 %v264_v5 }
  0x6c   : > { %592 = vmatprep.subr.mxu0 %v849_v3  ;;  %603 = vmatprep.mubr.msk.f32.mxu1 %vm850_vm2, %v849_v3 }
  0x6d   : > { %593 = vmatpush3.msra.mxu0 %v267_v6  ;;  %604 = vmatmul.mubr.msk.f32.vlgmr.msra.gmra.mxu1 %vm344_vm1, %v262_v7  ;;  %v263_v9 = vld [vmem:[#allocation2] sm:$0xff]  ;;  %v433_v18 = vld [vmem:[#allocation3] sm:$0xff] }
  0x6e   : > { %594 = vmatprep.subr.mxu0 %v849_v3  ;;  %596 = vmatprep.mubr.msk.f32.mxu0 %vm850_vm2, %v849_v3 }
  0x6f   : > { %595 = vmatpush3.msra.mxu0 %v266_v8 }
  0x70   : > { %597 = vmatmul.mubr.msk.f32.vlgmr.msra.gmra.mxu0 %vm270_vm3, %v263_v9 }
 0x12d   : > { %v414_v10 = vpop.f32.mrf.mxu1 }
 0x12f   : > { %v605_v11 = vpop.f32.mrf.mxu1 }
 0x130   : > { %v340_v12 = vpop.f32.mrf.mxu0 }
 0x131   : > { %v415_v14 = vadd.f32 %v414_v10, %v340_v12 }
 0x132   : > { %v598_v15 = vpop.f32.mrf.mxu0 }
 0x133   : > { %v425_v16 = vadd.f32 %v577_v13, %v415_v14 }
 0x135   : > { %684 = vtanh.f32 %v425_v16  ;;  %v426_v19 = vsub.f32 0.0, %v425_v16 }
 0x137   : > { %v427_v20 = vmul.f32 1.442695, %v426_v19 }
 0x139   : > { %686 = vpow2.f32 %v427_v20 }
 0x142   : > { %v685_v17 = vpop.eup %684 }
 0x143   : > { %440 = vrot.lane.b32.xlu0 %v685_v17, %s851_s19 }
 0x146   : > { %v687_v21 = vpop.eup %686 }
 0x147   : > { %435 = vrot.lane.b32.xlu0 %v433_v18, %s852_s7  ;;  %v429_v22 = vadd.f32 1.0, %v687_v21 }
 0x149   : > { %688 = vrcp.f32 %v429_v22 }
 0x156   : > { %v689_v23 = vpop.eup %688 }
 0x1b5   : > { %v441_v24 = vpop.permute.xlu0 %440 }
 0x1b6   : > { %v443_v25 = vmul.f32 %v689_v23, %v441_v24 }
 0x1b8   : > { %445 = vrot.lane.b32.xlu1 %v443_v25, %s852_s7 }
 0x1b9   : > { %v436_v26 = vpop.permute.xlu0 %435 }
 0x1ba   : > { %v438_v27 = vmul.f32 %v689_v23, %v436_v26 }
 0x22a   : > { %v446_v28 = vpop.permute.xlu1 %445 }
 0x22b   : > { %v448_v29 = vadd.f32 %v446_v28, %v438_v27 }
 0x22d   : > { %690 = vtanh.f32 %v448_v29  ;;  %456 = vrot.lane.b32.xlu0 %v448_v29, %s853_s8 }
 0x23a   : > { %v691_v30 = vpop.eup %690 }
 0x23b   : > { %451 = vrot.lane.b32.xlu1 %v691_v30, %s851_s19 }
 0x29f   : > { %v457_v31 = vpop.permute.xlu0 %456 }
 0x2a0   : > { %459 = vst.msk [vmem:[#allocation3] sm:$0xff] %vm270_vm3, %v457_v31 }
 0x2ad   : > { %v452_v32 = vpop.permute.xlu1 %451 }
 0x2ae   : > { %v454_v33 = vmul.f32 %v689_v23, %v452_v32 }
 0x2b0   : > { %461 = vrot.lane.b32.xlu1 %v454_v33, %s852_s7 }
 0x322   : > { %v462_v34 = vpop.permute.xlu1 %461 }
 0x323   : > { %464 = vst.msk [vmem:[#allocation2] sm:$0xff] %vm270_vm3, %v462_v34  ;;  %465 = vst.msk [vmem:[%s1010_s6] sm:$0xff] %vm270_vm3, %v462_v34 }
 0x324 PF: > { %s1051_s9 = smov %s950_s15  ;;  %p16_p11 = scmp.ge.s32.totalorder %s950_s15, 10  }
 0x325   : > { %s1052_s15 = smov %s832_s16  ;;  %s1053_s16 = smov %s836_s17 }
 0x326   : > { %s1054_s17 = smov %s960_s24  ;;  %s1055_s18 = smov %s1051_s9 }
 0x327   :  { %18 = sbr.rel (!%p16_p11) target bundleno = 5 (0x5), region = 92 }
 0x32c   :  { %485 = vsyncpa [#allocation5], 1 }
 0x32d   :  { %487 = vsyncpa [#allocation5 + $0x1], 1 }
 0x32e   :  { %488 = vsyncpa [#allocation7], 1 }
 0x32f   :  { %489 = vsyncpa [#allocation10], 1 }

// kernel: _lambda_.3
= control target key start
LH: loop header
LB: loop body
LE: loop exit
PB: predicated region body
PF: predicated region fallthrough
CT: control target
= control target key end

     0   :  { %s3390_s0 = inlined_call_operand.vmem [shape: f32[8,256], index: 0, kind: input, shape index: {}]   ;;  %s3391_s1 = inlined_call_operand.vmem [shape: f32[8,1000], index: 1, kind: input, shape index: {}]   ;;  %s3392_s2 = inlined_call_operand.vmem [shape: f32[256,1000], index: 2, kind: input, shape index: {}]   ;;  %s3393_s3 = inlined_call_operand.vmem [shape: f32[1,1000], index: 3, kind: input, shape index: {}]   ;;  %s3394_s4 = inlined_call_operand.vmem [shape: f32[1000,128], index: 4, kind: input, shape index: {}]   ;;  %s3395_s5 = inlined_call_operand.vmem [shape: f32[1000,128], index: 5, kind: input, shape index: {}]   ;;  %s3396_s6 = inlined_call_operand.vmem [shape: f32[1,128], index: 6, kind: input, shape index: {}]   ;;  %s3397_s7 = inlined_call_operand.hbm [shape: f32[8,128], index: 7, kind: output, shape index: {}]  }
   0x1   :  { %v150_v0 = vld [vmem:[%s3392_s2 + $0x3c8] sm:$0xff]  ;;  %v152_v1 = vld [vmem:[%s3392_s2 + $0x3d8] sm:$0xff]  ;;  %v149_v2 = vld [vmem:[%s3392_s2 + $0x3c0] sm:$0xff] }
   0x2   :  { %327 = vmatprep.subr.mxu0 %v150_v0  ;;  %398 = vmatprep.subr.mxu1 %v152_v1  ;;  %v151_v3 = vld [vmem:[%s3392_s2 + $0x3d0] sm:$0xff]  ;;  %v142_v4 = vld [vmem:[%s3392_s2 + $0x388] sm:$0xff]  ;;  %v144_v5 = vld [vmem:[%s3392_s2 + $0x398] sm:$0xff] }
   0x3   :  { %328 = vmatpush1.msra.mxu0 %v149_v2  ;;  %399 = vmatpush1.msra.mxu1 %v151_v3  ;;  %v141_v6 = vld [vmem:[%s3392_s2 + $0x380] sm:$0xff]  ;;  %v143_v7 = vld [vmem:[%s3392_s2 + $0x390] sm:$0xff]  ;;  %v134_v8 = vld [vmem:[%s3392_s2 + $0x348] sm:$0xff] }
   0x4   :  { %329 = vmatprep.subr.mxu0 %v142_v4  ;;  %400 = vmatprep.subr.mxu1 %v144_v5  ;;  %v136_v9 = vld [vmem:[%s3392_s2 + $0x358] sm:$0xff]  ;;  %v133_v10 = vld [vmem:[%s3392_s2 + $0x340] sm:$0xff]  ;;  %v135_v11 = vld [vmem:[%s3392_s2 + $0x350] sm:$0xff] }
   0x5   :  { %330 = vmatpush1.msra.mxu0 %v141_v6  ;;  %401 = vmatpush1.msra.mxu1 %v143_v7  ;;  %v126_v12 = vld [vmem:[%s3392_s2 + $0x308] sm:$0xff]  ;;  %v128_v13 = vld [vmem:[%s3392_s2 + $0x318] sm:$0xff]  ;;  %v125_v14 = vld [vmem:[%s3392_s2 + $0x300] sm:$0xff] }
   0x6   :  { %331 = vmatprep.subr.mxu0 %v134_v8  ;;  %402 = vmatprep.subr.mxu1 %v136_v9  ;;  %v127_v15 = vld [vmem:[%s3392_s2 + $0x310] sm:$0xff]  ;;  %v118_v16 = vld [vmem:[%s3392_s2 + $0x2c8] sm:$0xff]  ;;  %v120_v17 = vld [vmem:[%s3392_s2 + $0x2d8] sm:$0xff] }
   0x7   :  { %332 = vmatpush1.msra.mxu0 %v133_v10  ;;  %403 = vmatpush1.msra.mxu1 %v135_v11  ;;  %v117_v18 = vld [vmem:[%s3392_s2 + $0x2c0] sm:$0xff]  ;;  %v119_v19 = vld [vmem:[%s3392_s2 + $0x2d0] sm:$0xff]  ;;  %v110_v20 = vld [vmem:[%s3392_s2 + $0x288] sm:$0xff] }
   0x8   :  { %333 = vmatprep.subr.mxu0 %v126_v12  ;;  %404 = vmatprep.subr.mxu1 %v128_v13  ;;  %v112_v21 = vld [vmem:[%s3392_s2 + $0x298] sm:$0xff]  ;;  %v109_v22 = vld [vmem:[%s3392_s2 + $0x280] sm:$0xff]  ;;  %v111_v23 = vld [vmem:[%s3392_s2 + $0x290] sm:$0xff] }
   0x9   :  { %334 = vmatpush1.msra.mxu0 %v125_v14  ;;  %405 = vmatpush1.msra.mxu1 %v127_v15  ;;  %v102_v24 = vld [vmem:[%s3392_s2 + $0x248] sm:$0xff]  ;;  %v104_v25 = vld [vmem:[%s3392_s2 + $0x258] sm:$0xff]  ;;  %v101_v26 = vld [vmem:[%s3392_s2 + $0x240] sm:$0xff] }
   0xa   :  { %335 = vmatprep.subr.mxu0 %v118_v16  ;;  %406 = vmatprep.subr.mxu1 %v120_v17  ;;  %v103_v27 = vld [vmem:[%s3392_s2 + $0x250] sm:$0xff]  ;;  %v94_v28 = vld [vmem:[%s3392_s2 + $0x208] sm:$0xff]  ;;  %v96_v29 = vld [vmem:[%s3392_s2 + $0x218] sm:$0xff] }
   0xb   :  { %336 = vmatpush1.msra.mxu0 %v117_v18  ;;  %407 = vmatpush1.msra.mxu1 %v119_v19  ;;  %v93_v30 = vld [vmem:[%s3392_s2 + $0x200] sm:$0xff]  ;;  %v95_v31 = vld [vmem:[%s3392_s2 + $0x210] sm:$0xff]  ;;  %v86_v32 = vld [vmem:[%s3392_s2 + $0x1c8] sm:$0xff] }
   0xc   :  { %337 = vmatprep.subr.mxu0 %v110_v20  ;;  %408 = vmatprep.subr.mxu1 %v112_v21  ;;  %v88_v33 = vld [vmem:[%s3392_s2 + $0x1d8] sm:$0xff]  ;;  %v85_v34 = vld [vmem:[%s3392_s2 + $0x1c0] sm:$0xff]  ;;  %v87_v35 = vld [vmem:[%s3392_s2 + $0x1d0] sm:$0xff] }
   0xd   :  { %338 = vmatpush1.msra.mxu0 %v109_v22  ;;  %409 = vmatpush1.msra.mxu1 %v111_v23  ;;  %v78_v36 = vld [vmem:[%s3392_s2 + $0x188] sm:$0xff]  ;;  %v80_v37 = vld [vmem:[%s3392_s2 + $0x198] sm:$0xff]  ;;  %v77_v38 = vld [vmem:[%s3392_s2 + $0x180] sm:$0xff] }
   0xe   :  { %339 = vmatprep.subr.mxu0 %v102_v24  ;;  %410 = vmatprep.subr.mxu1 %v104_v25  ;;  %v79_v39 = vld [vmem:[%s3392_s2 + $0x190] sm:$0xff]  ;;  %v70_v40 = vld [vmem:[%s3392_s2 + $0x148] sm:$0xff]  ;;  %v72_v41 = vld [vmem:[%s3392_s2 + $0x158] sm:$0xff] }
   0xf   :  { %340 = vmatpush1.msra.mxu0 %v101_v26  ;;  %411 = vmatpush1.msra.mxu1 %v103_v27  ;;  %v69_v42 = vld [vmem:[%s3392_s2 + $0x140] sm:$0xff]  ;;  %v71_v43 = vld [vmem:[%s3392_s2 + $0x150] sm:$0xff]  ;;  %v62_v44 = vld [vmem:[%s3392_s2 + $0x108] sm:$0xff] }
  0x10   :  { %341 = vmatprep.subr.mxu0 %v94_v28  ;;  %412 = vmatprep.subr.mxu1 %v96_v29  ;;  %v64_v45 = vld [vmem:[%s3392_s2 + $0x118] sm:$0xff]  ;;  %v61_v46 = vld [vmem:[%s3392_s2 + $0x100] sm:$0xff]  ;;  %v63_v47 = vld [vmem:[%s3392_s2 + $0x110] sm:$0xff] }
  0x11   :  { %342 = vmatpush1.msra.mxu0 %v93_v30  ;;  %413 = vmatpush1.msra.mxu1 %v95_v31  ;;  %v54_v48 = vld [vmem:[%s3392_s2 + $0xc8] sm:$0xff]  ;;  %v56_v49 = vld [vmem:[%s3392_s2 + $0xd8] sm:$0xff]  ;;  %v53_v50 = vld [vmem:[%s3392_s2 + $0xc0] sm:$0xff] }
  0x12   :  { %343 = vmatprep.subr.mxu0 %v86_v32  ;;  %414 = vmatprep.subr.mxu1 %v88_v33  ;;  %v55_v51 = vld [vmem:[%s3392_s2 + $0xd0] sm:$0xff]  ;;  %v46_v52 = vld [vmem:[%s3392_s2 + $0x88] sm:$0xff]  ;;  %v48_v53 = vld [vmem:[%s3392_s2 + $0x98] sm:$0xff] }
  0x13   :  { %344 = vmatpush1.msra.mxu0 %v85_v34  ;;  %415 = vmatpush1.msra.mxu1 %v87_v35  ;;  %v45_v54 = vld [vmem:[%s3392_s2 + $0x80] sm:$0xff]  ;;  %v47_v55 = vld [vmem:[%s3392_s2 + $0x90] sm:$0xff]  ;;  %v38_v56 = vld [vmem:[%s3392_s2 + $0x48] sm:$0xff] }
  0x14   :  { %345 = vmatprep.subr.mxu0 %v78_v36  ;;  %416 = vmatprep.subr.mxu1 %v80_v37  ;;  %v40_v57 = vld [vmem:[%s3392_s2 + $0x58] sm:$0xff]  ;;  %v37_v58 = vld [vmem:[%s3392_s2 + $0x40] sm:$0xff]  ;;  %v39_v59 = vld [vmem:[%s3392_s2 + $0x50] sm:$0xff] }
  0x15   :  { %346 = vmatpush1.msra.mxu0 %v77_v38  ;;  %417 = vmatpush1.msra.mxu1 %v79_v39  ;;  %v30_v60 = vld [vmem:[%s3392_s2 + $0x8] sm:$0xff]  ;;  %v32_v61 = vld [vmem:[%s3392_s2 + $0x18] sm:$0xff]  ;;  %v29_v62 = vld [vmem:[%s3392_s2] sm:$0xff] }
  0x16   :  { %347 = vmatprep.subr.mxu0 %v70_v40  ;;  %418 = vmatprep.subr.mxu1 %v72_v41  ;;  %v31_v63 = vld [vmem:[%s3392_s2 + $0x10] sm:$0xff]  ;;  %v278_v0 = vld [vmem:[%s3392_s2 + $0x7c8] sm:$0xff]  ;;  %v280_v1 = vld [vmem:[%s3392_s2 + $0x7d8] sm:$0xff] }
  0x17   :  { %348 = vmatpush1.msra.mxu0 %v69_v42  ;;  %419 = vmatpush1.msra.mxu1 %v71_v43  ;;  %v277_v2 = vld [vmem:[%s3392_s2 + $0x7c0] sm:$0xff]  ;;  %v279_v3 = vld [vmem:[%s3392_s2 + $0x7d0] sm:$0xff]  ;;  %v270_v4 = vld [vmem:[%s3392_s2 + $0x788] sm:$0xff] }
  0x18   :  { %349 = vmatprep.subr.mxu0 %v62_v44  ;;  %420 = vmatprep.subr.mxu1 %v64_v45  ;;  %v272_v5 = vld [vmem:[%s3392_s2 + $0x798] sm:$0xff]  ;;  %v269_v6 = vld [vmem:[%s3392_s2 + $0x780] sm:$0xff]  ;;  %v271_v7 = vld [vmem:[%s3392_s2 + $0x790] sm:$0xff] }
  0x19   :  { %350 = vmatpush1.msra.mxu0 %v61_v46  ;;  %421 = vmatpush1.msra.mxu1 %v63_v47  ;;  %v262_v8 = vld [vmem:[%s3392_s2 + $0x748] sm:$0xff]  ;;  %v264_v9 = vld [vmem:[%s3392_s2 + $0x758] sm:$0xff]  ;;  %v261_v10 = vld [vmem:[%s3392_s2 + $0x740] sm:$0xff] }
  0x1a   :  { %351 = vmatprep.subr.mxu0 %v54_v48  ;;  %422 = vmatprep.subr.mxu1 %v56_v49  ;;  %v263_v11 = vld [vmem:[%s3392_s2 + $0x750] sm:$0xff]  ;;  %v254_v12 = vld [vmem:[%s3392_s2 + $0x708] sm:$0xff]  ;;  %v256_v13 = vld [vmem:[%s3392_s2 + $0x718] sm:$0xff] }
  0x1b   :  { %352 = vmatpush1.msra.mxu0 %v53_v50  ;;  %423 = vmatpush1.msra.mxu1 %v55_v51  ;;  %v253_v14 = vld [vmem:[%s3392_s2 + $0x700] sm:$0xff]  ;;  %v255_v15 = vld [vmem:[%s3392_s2 + $0x710] sm:$0xff]  ;;  %v246_v16 = vld [vmem:[%s3392_s2 + $0x6c8] sm:$0xff] }
  0x1c   :  { %353 = vmatprep.subr.mxu0 %v46_v52  ;;  %424 = vmatprep.subr.mxu1 %v48_v53  ;;  %v248_v17 = vld [vmem:[%s3392_s2 + $0x6d8] sm:$0xff]  ;;  %v245_v18 = vld [vmem:[%s3392_s2 + $0x6c0] sm:$0xff]  ;;  %v247_v19 = vld [vmem:[%s3392_s2 + $0x6d0] sm:$0xff] }
  0x1d   :  { %354 = vmatpush1.msra.mxu0 %v45_v54  ;;  %425 = vmatpush1.msra.mxu1 %v47_v55  ;;  %v238_v20 = vld [vmem:[%s3392_s2 + $0x688] sm:$0xff]  ;;  %v240_v21 = vld [vmem:[%s3392_s2 + $0x698] sm:$0xff]  ;;  %v237_v22 = vld [vmem:[%s3392_s2 + $0x680] sm:$0xff] }
  0x1e   :  { %355 = vmatprep.subr.mxu0 %v38_v56  ;;  %426 = vmatprep.subr.mxu1 %v40_v57  ;;  %v239_v23 = vld [vmem:[%s3392_s2 + $0x690] sm:$0xff]  ;;  %v230_v24 = vld [vmem:[%s3392_s2 + $0x648] sm:$0xff]  ;;  %v232_v25 = vld [vmem:[%s3392_s2 + $0x658] sm:$0xff] }
  0x1f   :  { %356 = vmatpush1.msra.mxu0 %v37_v58  ;;  %427 = vmatpush1.msra.mxu1 %v39_v59  ;;  %v229_v26 = vld [vmem:[%s3392_s2 + $0x640] sm:$0xff]  ;;  %v231_v27 = vld [vmem:[%s3392_s2 + $0x650] sm:$0xff]  ;;  %v222_v28 = vld [vmem:[%s3392_s2 + $0x608] sm:$0xff] }
  0x20   :  { %357 = vmatprep.subr.mxu0 %v30_v60  ;;  %428 = vmatprep.subr.mxu1 %v32_v61  ;;  %v224_v29 = vld [vmem:[%s3392_s2 + $0x618] sm:$0xff]  ;;  %v221_v30 = vld [vmem:[%s3392_s2 + $0x600] sm:$0xff]  ;;  %v223_v31 = vld [vmem:[%s3392_s2 + $0x610] sm:$0xff] }
  0x21   :  { %358 = vmatpush1.msra.mxu0 %v29_v62  ;;  %429 = vmatpush1.msra.mxu1 %v31_v63  ;;  %v214_v32 = vld [vmem:[%s3392_s2 + $0x5c8] sm:$0xff]  ;;  %v216_v33 = vld [vmem:[%s3392_s2 + $0x5d8] sm:$0xff]  ;;  %v213_v34 = vld [vmem:[%s3392_s2 + $0x5c0] sm:$0xff] }
  0x22   :  { %359 = vmatprep.subr.mxu0 %v278_v0  ;;  %430 = vmatprep.subr.mxu1 %v280_v1  ;;  %v215_v35 = vld [vmem:[%s3392_s2 + $0x5d0] sm:$0xff]  ;;  %v206_v36 = vld [vmem:[%s3392_s2 + $0x588] sm:$0xff]  ;;  %v208_v37 = vld [vmem:[%s3392_s2 + $0x598] sm:$0xff] }
  0x23   :  { %360 = vmatpush2.msra.mxu0 %v277_v2  ;;  %431 = vmatpush2.msra.mxu1 %v279_v3  ;;  %v205_v38 = vld [vmem:[%s3392_s2 + $0x580] sm:$0xff]  ;;  %v207_v39 = vld [vmem:[%s3392_s2 + $0x590] sm:$0xff]  ;;  %v198_v40 = vld [vmem:[%s3392_s2 + $0x548] sm:$0xff] }
  0x24   :  { %361 = vmatprep.subr.mxu0 %v270_v4  ;;  %432 = vmatprep.subr.mxu1 %v272_v5  ;;  %v200_v41 = vld [vmem:[%s3392_s2 + $0x558] sm:$0xff]  ;;  %v197_v42 = vld [vmem:[%s3392_s2 + $0x540] sm:$0xff]  ;;  %v199_v43 = vld [vmem:[%s3392_s2 + $0x550] sm:$0xff] }
  0x25   :  { %362 = vmatpush2.msra.mxu0 %v269_v6  ;;  %433 = vmatpush2.msra.mxu1 %v271_v7  ;;  %v190_v44 = vld [vmem:[%s3392_s2 + $0x508] sm:$0xff]  ;;  %v192_v45 = vld [vmem:[%s3392_s2 + $0x518] sm:$0xff]  ;;  %v189_v46 = vld [vmem:[%s3392_s2 + $0x500] sm:$0xff] }
  0x26   :  { %363 = vmatprep.subr.mxu0 %v262_v8  ;;  %434 = vmatprep.subr.mxu1 %v264_v9  ;;  %v191_v47 = vld [vmem:[%s3392_s2 + $0x510] sm:$0xff]  ;;  %v182_v48 = vld [vmem:[%s3392_s2 + $0x4c8] sm:$0xff]  ;;  %v184_v49 = vld [vmem:[%s3392_s2 + $0x4d8] sm:$0xff] }
  0x27   :  { %364 = vmatpush2.msra.mxu0 %v261_v10  ;;  %435 = vmatpush2.msra.mxu1 %v263_v11  ;;  %v181_v50 = vld [vmem:[%s3392_s2 + $0x4c0] sm:$0xff]  ;;  %v183_v51 = vld [vmem:[%s3392_s2 + $0x4d0] sm:$0xff]  ;;  %v174_v52 = vld [vmem:[%s3392_s2 + $0x488] sm:$0xff] }
  0x28   :  { %365 = vmatprep.subr.mxu0 %v254_v12  ;;  %436 = vmatprep.subr.mxu1 %v256_v13  ;;  %v176_v53 = vld [vmem:[%s3392_s2 + $0x498] sm:$0xff]  ;;  %v173_v54 = vld [vmem:[%s3392_s2 + $0x480] sm:$0xff]  ;;  %v175_v55 = vld [vmem:[%s3392_s2 + $0x490] sm:$0xff] }
  0x29   :  { %366 = vmatpush2.msra.mxu0 %v253_v14  ;;  %437 = vmatpush2.msra.mxu1 %v255_v15  ;;  %v166_v56 = vld [vmem:[%s3392_s2 + $0x448] sm:$0xff]  ;;  %v168_v57 = vld [vmem:[%s3392_s2 + $0x458] sm:$0xff]  ;;  %v165_v58 = vld [vmem:[%s3392_s2 + $0x440] sm:$0xff] }
  0x2a   :  { %367 = vmatprep.subr.mxu0 %v246_v16  ;;  %438 = vmatprep.subr.mxu1 %v248_v17  ;;  %v167_v59 = vld [vmem:[%s3392_s2 + $0x450] sm:$0xff]  ;;  %v158_v60 = vld [vmem:[%s3392_s2 + $0x408] sm:$0xff]  ;;  %v160_v61 = vld [vmem:[%s3392_s2 + $0x418] sm:$0xff] }
  0x2b   :  { %368 = vmatpush2.msra.mxu0 %v245_v18  ;;  %439 = vmatpush2.msra.mxu1 %v247_v19  ;;  %v157_v62 = vld [vmem:[%s3392_s2 + $0x400] sm:$0xff]  ;;  %v2122_v63 = vld [vmem:[%s3390_s0 + $0x8] sm:$0xff]  ;;  %v159_v0 = vld [vmem:[%s3392_s2 + $0x410] sm:$0xff] }
  0x2c   :  { %369 = vmatprep.subr.mxu0 %v238_v20  ;;  %440 = vmatprep.subr.mxu1 %v240_v21  ;;  %v2130_v1 = vld [vmem:[%s3390_s0] sm:$0xff]  ;;  %v154_v2 = vld [vmem:[%s3392_s2 + $0x3e8] sm:$0xff]  ;;  %v156_v3 = vld [vmem:[%s3392_s2 + $0x3f8] sm:$0xff] }
  0x2d   :  { %370 = vmatpush2.msra.mxu0 %v237_v22  ;;  %441 = vmatpush2.msra.mxu1 %v239_v23  ;;  %v153_v4 = vld [vmem:[%s3392_s2 + $0x3e0] sm:$0xff]  ;;  %v155_v5 = vld [vmem:[%s3392_s2 + $0x3f0] sm:$0xff]  ;;  %v146_v6 = vld [vmem:[%s3392_s2 + $0x3a8] sm:$0xff] }
  0x2e   :  { %371 = vmatprep.subr.mxu0 %v230_v24  ;;  %442 = vmatprep.subr.mxu1 %v232_v25  ;;  %v148_v7 = vld [vmem:[%s3392_s2 + $0x3b8] sm:$0xff]  ;;  %v145_v8 = vld [vmem:[%s3392_s2 + $0x3a0] sm:$0xff]  ;;  %v147_v9 = vld [vmem:[%s3392_s2 + $0x3b0] sm:$0xff] }
  0x2f   :  { %372 = vmatpush2.msra.mxu0 %v229_v26  ;;  %443 = vmatpush2.msra.mxu1 %v231_v27  ;;  %v138_v10 = vld [vmem:[%s3392_s2 + $0x368] sm:$0xff]  ;;  %v140_v11 = vld [vmem:[%s3392_s2 + $0x378] sm:$0xff]  ;;  %v137_v12 = vld [vmem:[%s3392_s2 + $0x360] sm:$0xff] }
  0x30   :  { %373 = vmatprep.subr.mxu0 %v222_v28  ;;  %444 = vmatprep.subr.mxu1 %v224_v29  ;;  %v139_v13 = vld [vmem:[%s3392_s2 + $0x370] sm:$0xff]  ;;  %v130_v14 = vld [vmem:[%s3392_s2 + $0x328] sm:$0xff]  ;;  %v132_v15 = vld [vmem:[%s3392_s2 + $0x338] sm:$0xff] }
  0x31   :  { %374 = vmatpush2.msra.mxu0 %v221_v30  ;;  %445 = vmatpush2.msra.mxu1 %v223_v31  ;;  %v129_v16 = vld [vmem:[%s3392_s2 + $0x320] sm:$0xff]  ;;  %v131_v17 = vld [vmem:[%s3392_s2 + $0x330] sm:$0xff]  ;;  %v122_v18 = vld [vmem:[%s3392_s2 + $0x2e8] sm:$0xff] }
  0x32   :  { %375 = vmatprep.subr.mxu0 %v214_v32  ;;  %446 = vmatprep.subr.mxu1 %v216_v33  ;;  %v124_v19 = vld [vmem:[%s3392_s2 + $0x2f8] sm:$0xff]  ;;  %v121_v20 = vld [vmem:[%s3392_s2 + $0x2e0] sm:$0xff]  ;;  %v123_v21 = vld [vmem:[%s3392_s2 + $0x2f0] sm:$0xff] }
  0x33   :  { %376 = vmatpush2.msra.mxu0 %v213_v34  ;;  %447 = vmatpush2.msra.mxu1 %v215_v35  ;;  %v114_v22 = vld [vmem:[%s3392_s2 + $0x2a8] sm:$0xff]  ;;  %v116_v23 = vld [vmem:[%s3392_s2 + $0x2b8] sm:$0xff]  ;;  %v113_v24 = vld [vmem:[%s3392_s2 + $0x2a0] sm:$0xff] }
  0x34   :  { %377 = vmatprep.subr.mxu0 %v206_v36  ;;  %448 = vmatprep.subr.mxu1 %v208_v37  ;;  %v115_v25 = vld [vmem:[%s3392_s2 + $0x2b0] sm:$0xff]  ;;  %v106_v26 = vld [vmem:[%s3392_s2 + $0x268] sm:$0xff]  ;;  %v108_v27 = vld [vmem:[%s3392_s2 + $0x278] sm:$0xff] }
  0x35   :  { %378 = vmatpush2.msra.mxu0 %v205_v38  ;;  %449 = vmatpush2.msra.mxu1 %v207_v39  ;;  %v105_v28 = vld [vmem:[%s3392_s2 + $0x260] sm:$0xff]  ;;  %v107_v29 = vld [vmem:[%s3392_s2 + $0x270] sm:$0xff]  ;;  %v98_v30 = vld [vmem:[%s3392_s2 + $0x228] sm:$0xff] }
  0x36   :  { %379 = vmatprep.subr.mxu0 %v198_v40  ;;  %450 = vmatprep.subr.mxu1 %v200_v41  ;;  %v100_v31 = vld [vmem:[%s3392_s2 + $0x238] sm:$0xff]  ;;  %v97_v32 = vld [vmem:[%s3392_s2 + $0x220] sm:$0xff]  ;;  %v99_v33 = vld [vmem:[%s3392_s2 + $0x230] sm:$0xff] }
  0x37   :  { %380 = vmatpush2.msra.mxu0 %v197_v42  ;;  %451 = vmatpush2.msra.mxu1 %v199_v43  ;;  %v90_v34 = vld [vmem:[%s3392_s2 + $0x1e8] sm:$0xff]  ;;  %v92_v35 = vld [vmem:[%s3392_s2 + $0x1f8] sm:$0xff]  ;;  %v89_v36 = vld [vmem:[%s3392_s2 + $0x1e0] sm:$0xff] }
  0x38   :  { %381 = vmatprep.subr.mxu0 %v190_v44  ;;  %452 = vmatprep.subr.mxu1 %v192_v45  ;;  %v91_v37 = vld [vmem:[%s3392_s2 + $0x1f0] sm:$0xff]  ;;  %v82_v38 = vld [vmem:[%s3392_s2 + $0x1a8] sm:$0xff]  ;;  %v84_v39 = vld [vmem:[%s3392_s2 + $0x1b8] sm:$0xff] }
  0x39   :  { %382 = vmatpush2.msra.mxu0 %v189_v46  ;;  %453 = vmatpush2.msra.mxu1 %v191_v47  ;;  %v81_v40 = vld [vmem:[%s3392_s2 + $0x1a0] sm:$0xff]  ;;  %v83_v41 = vld [vmem:[%s3392_s2 + $0x1b0] sm:$0xff]  ;;  %v74_v42 = vld [vmem:[%s3392_s2 + $0x168] sm:$0xff] }
  0x3a   :  { %383 = vmatprep.subr.mxu0 %v182_v48  ;;  %454 = vmatprep.subr.mxu1 %v184_v49  ;;  %v76_v43 = vld [vmem:[%s3392_s2 + $0x178] sm:$0xff]  ;;  %v73_v44 = vld [vmem:[%s3392_s2 + $0x160] sm:$0xff]  ;;  %v75_v45 = vld [vmem:[%s3392_s2 + $0x170] sm:$0xff] }
  0x3b   :  { %384 = vmatpush2.msra.mxu0 %v181_v50  ;;  %455 = vmatpush2.msra.mxu1 %v183_v51  ;;  %v66_v46 = vld [vmem:[%s3392_s2 + $0x128] sm:$0xff]  ;;  %v68_v47 = vld [vmem:[%s3392_s2 + $0x138] sm:$0xff]  ;;  %v65_v48 = vld [vmem:[%s3392_s2 + $0x120] sm:$0xff] }
  0x3c   :  { %385 = vmatprep.subr.mxu0 %v174_v52  ;;  %456 = vmatprep.subr.mxu1 %v176_v53  ;;  %v67_v49 = vld [vmem:[%s3392_s2 + $0x130] sm:$0xff]  ;;  %v58_v50 = vld [vmem:[%s3392_s2 + $0xe8] sm:$0xff]  ;;  %v60_v51 = vld [vmem:[%s3392_s2 + $0xf8] sm:$0xff] }
  0x3d   :  { %386 = vmatpush2.msra.mxu0 %v173_v54  ;;  %457 = vmatpush2.msra.mxu1 %v175_v55  ;;  %v57_v52 = vld [vmem:[%s3392_s2 + $0xe0] sm:$0xff]  ;;  %v59_v53 = vld [vmem:[%s3392_s2 + $0xf0] sm:$0xff]  ;;  %v50_v54 = vld [vmem:[%s3392_s2 + $0xa8] sm:$0xff] }
  0x3e   :  { %387 = vmatprep.subr.mxu0 %v166_v56  ;;  %458 = vmatprep.subr.mxu1 %v168_v57  ;;  %v52_v55 = vld [vmem:[%s3392_s2 + $0xb8] sm:$0xff]  ;;  %v49_v56 = vld [vmem:[%s3392_s2 + $0xa0] sm:$0xff]  ;;  %v51_v57 = vld [vmem:[%s3392_s2 + $0xb0] sm:$0xff] }
  0x3f   :  { %388 = vmatpush2.msra.mxu0 %v165_v58  ;;  %459 = vmatpush2.msra.mxu1 %v167_v59  ;;  %v42_v58 = vld [vmem:[%s3392_s2 + $0x68] sm:$0xff]  ;;  %v44_v59 = vld [vmem:[%s3392_s2 + $0x78] sm:$0xff] }
  0x40   :  { %389 = vmatprep.subr.mxu0 %v158_v60  ;;  %460 = vmatprep.subr.mxu1 %v160_v61  ;;  %v41_v60 = vld [vmem:[%s3392_s2 + $0x60] sm:$0xff]  ;;  %v43_v61 = vld [vmem:[%s3392_s2 + $0x70] sm:$0xff] }
  0x41   :  { %390 = vmatpush2.msra.mxu0 %v157_v62  ;;  %391 = vmatprep.mubr.f32.mxu0 %v2122_v63  ;;  %v34_v62 = vld [vmem:[%s3392_s2 + $0x28] sm:$0xff] }
  0x42   :  { %461 = vmatpush2.msra.mxu1 %v159_v0  ;;  %462 = vmatprep.mubr.f32.mxu1 %v2122_v63  ;;  %v36_v0 = vld [vmem:[%s3392_s2 + $0x38] sm:$0xff] }
  0x43   :  { %392 = vmatmul.mubr.f32.vlgmr.msra.gmra.mxu0 %v2130_v1  ;;  %463 = vmatmul.mubr.f32.vlgmr.msra.gmra.mxu1 %v2130_v1 }
  0x44   :  { %469 = vmatprep.subr.mxu0 %v154_v2  ;;  %540 = vmatprep.subr.mxu1 %v156_v3  ;;  %v33_v2 = vld [vmem:[%s3392_s2 + $0x20] sm:$0xff]  ;;  %v35_v3 = vld [vmem:[%s3392_s2 + $0x30] sm:$0xff] }
  0x45   :  { %470 = vmatpush1.msra.mxu0 %v153_v4  ;;  %541 = vmatpush1.msra.mxu1 %v155_v5 }
  0x46   :  { %471 = vmatprep.subr.mxu0 %v146_v6  ;;  %542 = vmatprep.subr.mxu1 %v148_v7 }
  0x47   :  { %472 = vmatpush1.msra.mxu0 %v145_v8  ;;  %543 = vmatpush1.msra.mxu1 %v147_v9 }
  0x48   :  { %473 = vmatprep.subr.mxu0 %v138_v10  ;;  %544 = vmatprep.subr.mxu1 %v140_v11 }
  0x49   :  { %474 = vmatpush1.msra.mxu0 %v137_v12  ;;  %545 = vmatpush1.msra.mxu1 %v139_v13 }
  0x4a   :  { %475 = vmatprep.subr.mxu0 %v130_v14  ;;  %546 = vmatprep.subr.mxu1 %v132_v15 }
  0x4b   :  { %476 = vmatpush1.msra.mxu0 %v129_v16  ;;  %547 = vmatpush1.msra.mxu1 %v131_v17 }
  0x4c   :  { %477 = vmatprep.subr.mxu0 %v122_v18  ;;  %548 = vmatprep.subr.mxu1 %v124_v19 }
  0x4d   :  { %478 = vmatpush1.msra.mxu0 %v121_v20  ;;  %549 = vmatpush1.msra.mxu1 %v123_v21 }
  0x4e   :  { %479 = vmatprep.subr.mxu0 %v114_v22  ;;  %550 = vmatprep.subr.mxu1 %v116_v23 }
  0x4f   :  { %480 = vmatpush1.msra.mxu0 %v113_v24  ;;  %551 = vmatpush1.msra.mxu1 %v115_v25 }
  0x50   :  { %481 = vmatprep.subr.mxu0 %v106_v26  ;;  %552 = vmatprep.subr.mxu1 %v108_v27 }
  0x51   :  { %482 = vmatpush1.msra.mxu0 %v105_v28  ;;  %553 = vmatpush1.msra.mxu1 %v107_v29 }
  0x52   :  { %483 = vmatprep.subr.mxu0 %v98_v30  ;;  %554 = vmatprep.subr.mxu1 %v100_v31 }
  0x53   :  { %484 = vmatpush1.msra.mxu0 %v97_v32  ;;  %555 = vmatpush1.msra.mxu1 %v99_v33 }
  0x54   :  { %485 = vmatprep.subr.mxu0 %v90_v34  ;;  %556 = vmatprep.subr.mxu1 %v92_v35 }
  0x55   :  { %486 = vmatpush1.msra.mxu0 %v89_v36  ;;  %557 = vmatpush1.msra.mxu1 %v91_v37 }
  0x56   :  { %487 = vmatprep.subr.mxu0 %v82_v38  ;;  %558 = vmatprep.subr.mxu1 %v84_v39 }
  0x57   :  { %488 = vmatpush1.msra.mxu0 %v81_v40  ;;  %559 = vmatpush1.msra.mxu1 %v83_v41 }
  0x58   :  { %489 = vmatprep.subr.mxu0 %v74_v42  ;;  %560 = vmatprep.subr.mxu1 %v76_v43 }
  0x59   :  { %490 = vmatpush1.msra.mxu0 %v73_v44  ;;  %561 = vmatpush1.msra.mxu1 %v75_v45 }
  0x5a   :  { %491 = vmatprep.subr.mxu0 %v66_v46  ;;  %562 = vmatprep.subr.mxu1 %v68_v47 }
  0x5b   :  { %492 = vmatpush1.msra.mxu0 %v65_v48  ;;  %563 = vmatpush1.msra.mxu1 %v67_v49 }
  0x5c   :  { %493 = vmatprep.subr.mxu0 %v58_v50  ;;  %564 = vmatprep.subr.mxu1 %v60_v51 }
  0x5d   :  { %494 = vmatpush1.msra.mxu0 %v57_v52  ;;  %565 = vmatpush1.msra.mxu1 %v59_v53 }
  0x5e   :  { %495 = vmatprep.subr.mxu0 %v50_v54  ;;  %566 = vmatprep.subr.mxu1 %v52_v55 }
  0x5f   :  { %496 = vmatpush1.msra.mxu0 %v49_v56  ;;  %567 = vmatpush1.msra.mxu1 %v51_v57 }
  0x60   :  { %497 = vmatprep.subr.mxu0 %v42_v58  ;;  %568 = vmatprep.subr.mxu1 %v44_v59 }
  0x61   :  { %12 = vsyncpa [#allocation3], 0  ;;  %498 = vmatpush1.msra.mxu0 %v41_v60  ;;  %569 = vmatpush1.msra.mxu1 %v43_v61  ;;  %v282_v4 = vld [vmem:[%s3392_s2 + $0x7e8] sm:$0xff]  ;;  %v284_v5 = vld [vmem:[%s3392_s2 + $0x7f8] sm:$0xff]  ;;  %vm869_vm0 = vcmask 850944   ;;  %s1697_s16 = smov [#allocation2]  }
  0x62   :  { %499 = vmatprep.subr.mxu0 %v34_v62  ;;  %570 = vmatprep.subr.mxu1 %v36_v0  ;;  %v281_v6 = vld [vmem:[%s3392_s2 + $0x7e0] sm:$0xff]  ;;  %v283_v7 = vld [vmem:[%s3392_s2 + $0x7f0] sm:$0xff]  ;;  %v274_v8 = vld [vmem:[%s3392_s2 + $0x7a8] sm:$0xff]  ;;  %s1451_s17 = sshll.u32 %s1697_s16, 4  ;;  %s1452_s17 = int_to_ptr.vmem [resolvable:$true] %s1451_s17 }
  0x63   :  { %500 = vmatpush1.msra.mxu0 %v33_v2  ;;  %571 = vmatpush1.msra.mxu1 %v35_v3  ;;  %v276_v9 = vld [vmem:[%s3392_s2 + $0x7b8] sm:$0xff]  ;;  %v273_v10 = vld [vmem:[%s3392_s2 + $0x7a0] sm:$0xff]  ;;  %v275_v11 = vld [vmem:[%s3392_s2 + $0x7b0] sm:$0xff]  ;;  %s1674_s18 = scalar_lea.vmem %s1452_s17, 128  ;;  %p1679_p1 = scmp.lt.s32.totalorder %s1452_s17, %s1452_s17 }
  0x64   :  { %501 = vmatprep.subr.mxu0 %v282_v4  ;;  %572 = vmatprep.subr.mxu1 %v284_v5  ;;  %v266_v12 = vld [vmem:[%s3392_s2 + $0x768] sm:$0xff]  ;;  %v268_v13 = vld [vmem:[%s3392_s2 + $0x778] sm:$0xff]  ;;  %v265_v14 = vld [vmem:[%s3392_s2 + $0x760] sm:$0xff]  ;;  %p1675_p0 = scmp.ne.s32.totalorder %s1452_s17, %s1674_s18  ;;  %p1680_p2 = scmp.lt.s32.totalorder %s1674_s18, %s1674_s18 }
  0x65   :  { %502 = vmatpush2.msra.mxu0 %v281_v6  ;;  %573 = vmatpush2.msra.mxu1 %v283_v7  ;;  %v267_v15 = vld [vmem:[%s3392_s2 + $0x770] sm:$0xff]  ;;  %v258_v16 = vld [vmem:[%s3392_s2 + $0x728] sm:$0xff]  ;;  %v260_v17 = vld [vmem:[%s3392_s2 + $0x738] sm:$0xff] }
  0x66   :  { %503 = vmatprep.subr.mxu0 %v274_v8  ;;  %574 = vmatprep.subr.mxu1 %v276_v9  ;;  %v257_v18 = vld [vmem:[%s3392_s2 + $0x720] sm:$0xff]  ;;  %v259_v19 = vld [vmem:[%s3392_s2 + $0x730] sm:$0xff]  ;;  %v250_v20 = vld [vmem:[%s3392_s2 + $0x6e8] sm:$0xff]  ;;  %p1681_p3 = por %p1680_p2, %p1679_p1 }
  0x67   :  { %504 = vmatpush2.msra.mxu0 %v273_v10  ;;  %575 = vmatpush2.msra.mxu1 %v275_v11  ;;  %v252_v21 = vld [vmem:[%s3392_s2 + $0x6f8] sm:$0xff]  ;;  %v249_v22 = vld [vmem:[%s3392_s2 + $0x6e0] sm:$0xff]  ;;  %v251_v23 = vld [vmem:[%s3392_s2 + $0x6f0] sm:$0xff] }
  0x68   :  { %505 = vmatprep.subr.mxu0 %v266_v12  ;;  %576 = vmatprep.subr.mxu1 %v268_v13  ;;  %v242_v24 = vld [vmem:[%s3392_s2 + $0x6a8] sm:$0xff]  ;;  %v244_v25 = vld [vmem:[%s3392_s2 + $0x6b8] sm:$0xff]  ;;  %v241_v26 = vld [vmem:[%s3392_s2 + $0x6a0] sm:$0xff]  ;;  %p1682_p4 = pnand %p1681_p3, %p1675_p0 }
  0x69   :  { %506 = vmatpush2.msra.mxu0 %v265_v14  ;;  %577 = vmatpush2.msra.mxu1 %v267_v15  ;;  %v243_v27 = vld [vmem:[%s3392_s2 + $0x6b0] sm:$0xff]  ;;  %v234_v28 = vld [vmem:[%s3392_s2 + $0x668] sm:$0xff]  ;;  %v236_v29 = vld [vmem:[%s3392_s2 + $0x678] sm:$0xff] }
  0x6a   :  { %507 = vmatprep.subr.mxu0 %v258_v16  ;;  %578 = vmatprep.subr.mxu1 %v260_v17  ;;  %v233_v30 = vld [vmem:[%s3392_s2 + $0x660] sm:$0xff]  ;;  %v235_v31 = vld [vmem:[%s3392_s2 + $0x670] sm:$0xff]  ;;  %v226_v32 = vld [vmem:[%s3392_s2 + $0x628] sm:$0xff] }
  0x6b   :  { %508 = vmatpush2.msra.mxu0 %v257_v18  ;;  %579 = vmatpush2.msra.mxu1 %v259_v19  ;;  %v228_v33 = vld [vmem:[%s3392_s2 + $0x638] sm:$0xff]  ;;  %v225_v34 = vld [vmem:[%s3392_s2 + $0x620] sm:$0xff]  ;;  %v227_v35 = vld [vmem:[%s3392_s2 + $0x630] sm:$0xff]  ;;  %v1696_v18 = vmov 0.0  }
  0x6c   :  { %509 = vmatprep.subr.mxu0 %v250_v20  ;;  %580 = vmatprep.subr.mxu1 %v252_v21  ;;  %v218_v36 = vld [vmem:[%s3392_s2 + $0x5e8] sm:$0xff]  ;;  %v220_v37 = vld [vmem:[%s3392_s2 + $0x5f8] sm:$0xff]  ;;  %v217_v38 = vld [vmem:[%s3392_s2 + $0x5e0] sm:$0xff] }
  0x6d   :  { %510 = vmatpush2.msra.mxu0 %v249_v22  ;;  %581 = vmatpush2.msra.mxu1 %v251_v23  ;;  %v219_v39 = vld [vmem:[%s3392_s2 + $0x5f0] sm:$0xff]  ;;  %v210_v40 = vld [vmem:[%s3392_s2 + $0x5a8] sm:$0xff]  ;;  %v212_v41 = vld [vmem:[%s3392_s2 + $0x5b8] sm:$0xff] }
  0x6e   :  { %511 = vmatprep.subr.mxu0 %v242_v24  ;;  %582 = vmatprep.subr.mxu1 %v244_v25  ;;  %v209_v42 = vld [vmem:[%s3392_s2 + $0x5a0] sm:$0xff]  ;;  %v211_v43 = vld [vmem:[%s3392_s2 + $0x5b0] sm:$0xff]  ;;  %v202_v44 = vld [vmem:[%s3392_s2 + $0x568] sm:$0xff] }
  0x6f   :  { %512 = vmatpush2.msra.mxu0 %v241_v26  ;;  %583 = vmatpush2.msra.mxu1 %v243_v27  ;;  %v204_v45 = vld [vmem:[%s3392_s2 + $0x578] sm:$0xff]  ;;  %v201_v46 = vld [vmem:[%s3392_s2 + $0x560] sm:$0xff]  ;;  %v203_v47 = vld [vmem:[%s3392_s2 + $0x570] sm:$0xff] }
  0x70   :  { %513 = vmatprep.subr.mxu0 %v234_v28  ;;  %584 = vmatprep.subr.mxu1 %v236_v29  ;;  %v194_v48 = vld [vmem:[%s3392_s2 + $0x528] sm:$0xff]  ;;  %v196_v49 = vld [vmem:[%s3392_s2 + $0x538] sm:$0xff]  ;;  %v193_v50 = vld [vmem:[%s3392_s2 + $0x520] sm:$0xff] }
  0x71   :  { %514 = vmatpush2.msra.mxu0 %v233_v30  ;;  %585 = vmatpush2.msra.mxu1 %v235_v31  ;;  %v195_v51 = vld [vmem:[%s3392_s2 + $0x530] sm:$0xff]  ;;  %v186_v52 = vld [vmem:[%s3392_s2 + $0x4e8] sm:$0xff]  ;;  %v188_v53 = vld [vmem:[%s3392_s2 + $0x4f8] sm:$0xff] }
  0x72   :  { %515 = vmatprep.subr.mxu0 %v226_v32  ;;  %586 = vmatprep.subr.mxu1 %v228_v33  ;;  %v185_v54 = vld [vmem:[%s3392_s2 + $0x4e0] sm:$0xff]  ;;  %v187_v55 = vld [vmem:[%s3392_s2 + $0x4f0] sm:$0xff]  ;;  %v178_v56 = vld [vmem:[%s3392_s2 + $0x4a8] sm:$0xff] }
  0x73   :  { %516 = vmatpush2.msra.mxu0 %v225_v34  ;;  %587 = vmatpush2.msra.mxu1 %v227_v35  ;;  %v180_v57 = vld [vmem:[%s3392_s2 + $0x4b8] sm:$0xff]  ;;  %v177_v58 = vld [vmem:[%s3392_s2 + $0x4a0] sm:$0xff]  ;;  %v179_v59 = vld [vmem:[%s3392_s2 + $0x4b0] sm:$0xff] }
  0x74   :  { %517 = vmatprep.subr.mxu0 %v218_v36  ;;  %588 = vmatprep.subr.mxu1 %v220_v37  ;;  %v170_v60 = vld [vmem:[%s3392_s2 + $0x468] sm:$0xff]  ;;  %v172_v61 = vld [vmem:[%s3392_s2 + $0x478] sm:$0xff]  ;;  %v169_v62 = vld [vmem:[%s3392_s2 + $0x460] sm:$0xff] }
  0x75   :  { %518 = vmatpush2.msra.mxu0 %v217_v38  ;;  %589 = vmatpush2.msra.mxu1 %v219_v39  ;;  %v171_v0 = vld [vmem:[%s3392_s2 + $0x470] sm:$0xff]  ;;  %v162_v2 = vld [vmem:[%s3392_s2 + $0x428] sm:$0xff]  ;;  %v164_v3 = vld [vmem:[%s3392_s2 + $0x438] sm:$0xff] }
  0x76   :  { %519 = vmatprep.subr.mxu0 %v210_v40  ;;  %590 = vmatprep.subr.mxu1 %v212_v41  ;;  %v161_v4 = vld [vmem:[%s3392_s2 + $0x420] sm:$0xff]  ;;  %v163_v5 = vld [vmem:[%s3392_s2 + $0x430] sm:$0xff]  ;;  %v775_v6 = vld [vmem:[%s3395_s5 + $0xf8] sm:$0xff] }
  0x77   :  { %520 = vmatpush2.msra.mxu0 %v209_v42  ;;  %591 = vmatpush2.msra.mxu1 %v211_v43  ;;  %v759_v7 = vld [vmem:[%s3395_s5 + $0x78] sm:$0xff]  ;;  %v774_v8 = vld [vmem:[%s3395_s5 + $0xf0] sm:$0xff]  ;;  %v757_v10 = vld [vmem:[%s3395_s5 + $0x68] sm:$0xff] }
  0x78   :  { %521 = vmatprep.subr.mxu0 %v202_v44  ;;  %592 = vmatprep.subr.mxu1 %v204_v45  ;;  %v758_v9 = vld [vmem:[%s3395_s5 + $0x70] sm:$0xff]  ;;  %v756_v11 = vld [vmem:[%s3395_s5 + $0x60] sm:$0xff]  ;;  %v771_v12 = vld [vmem:[%s3395_s5 + $0xd8] sm:$0xff] }
  0x79   :  { %522 = vmatpush2.msra.mxu0 %v201_v46  ;;  %593 = vmatpush2.msra.mxu1 %v203_v47  ;;  %v755_v13 = vld [vmem:[%s3395_s5 + $0x58] sm:$0xff]  ;;  %v770_v14 = vld [vmem:[%s3395_s5 + $0xd0] sm:$0xff]  ;;  %v769_v16 = vld [vmem:[%s3395_s5 + $0xc8] sm:$0xff] }
  0x7a   :  { %523 = vmatprep.subr.mxu0 %v194_v48  ;;  %594 = vmatprep.subr.mxu1 %v196_v49  ;;  %v754_v15 = vld [vmem:[%s3395_s5 + $0x50] sm:$0xff]  ;;  %v753_v17 = vld [vmem:[%s3395_s5 + $0x48] sm:$0xff]  ;;  %v855_v19 = vld [vmem:[%s3395_s5 + $0x378] sm:$0xff] }
  0x7b   :  { %524 = vmatpush2.msra.mxu0 %v193_v50  ;;  %595 = vmatpush2.msra.mxu1 %v195_v51  ;;  %v768_v20 = vld [vmem:[%s3395_s5 + $0xc0] sm:$0xff]  ;;  %v854_v22 = vld [vmem:[%s3395_s5 + $0x370] sm:$0xff]  ;;  %v767_v23 = vld [vmem:[%s3395_s5 + $0xb8] sm:$0xff] }
  0x7c   :  { %525 = vmatprep.subr.mxu0 %v186_v52  ;;  %596 = vmatprep.subr.mxu1 %v188_v53  ;;  %v752_v21 = vld [vmem:[%s3395_s5 + $0x40] sm:$0xff]  ;;  %v751_v24 = vld [vmem:[%s3395_s5 + $0x38] sm:$0xff]  ;;  %v853_v25 = vld [vmem:[%s3395_s5 + $0x368] sm:$0xff] }
  0x7d   :  { %526 = vmatpush2.msra.mxu0 %v185_v54  ;;  %597 = vmatpush2.msra.mxu1 %v187_v55  ;;  %v766_v26 = vld [vmem:[%s3395_s5 + $0xb0] sm:$0xff]  ;;  %v852_v28 = vld [vmem:[%s3395_s5 + $0x360] sm:$0xff]  ;;  %v765_v29 = vld [vmem:[%s3395_s5 + $0xa8] sm:$0xff] }
  0x7e   :  { %527 = vmatprep.subr.mxu0 %v178_v56  ;;  %598 = vmatprep.subr.mxu1 %v180_v57  ;;  %v750_v27 = vld [vmem:[%s3395_s5 + $0x30] sm:$0xff]  ;;  %v749_v30 = vld [vmem:[%s3395_s5 + $0x28] sm:$0xff]  ;;  %v851_v31 = vld [vmem:[%s3395_s5 + $0x358] sm:$0xff] }
  0x7f   :  { %528 = vmatpush2.msra.mxu0 %v177_v58  ;;  %599 = vmatpush2.msra.mxu1 %v179_v59  ;;  %v764_v32 = vld [vmem:[%s3395_s5 + $0xa0] sm:$0xff]  ;;  %v850_v34 = vld [vmem:[%s3395_s5 + $0x350] sm:$0xff]  ;;  %v763_v35 = vld [vmem:[%s3395_s5 + $0x98] sm:$0xff] }
  0x80   :  { %529 = vmatprep.subr.mxu0 %v170_v60  ;;  %600 = vmatprep.subr.mxu1 %v172_v61  ;;  %v748_v33 = vld [vmem:[%s3395_s5 + $0x20] sm:$0xff]  ;;  %v747_v36 = vld [vmem:[%s3395_s5 + $0x18] sm:$0xff]  ;;  %v849_v37 = vld [vmem:[%s3395_s5 + $0x348] sm:$0xff] }
  0x81   :  { %530 = vmatpush2.msra.mxu0 %v169_v62  ;;  %601 = vmatpush2.msra.mxu1 %v171_v0  ;;  %v762_v38 = vld [vmem:[%s3395_s5 + $0x90] sm:$0xff]  ;;  %v848_v40 = vld [vmem:[%s3395_s5 + $0x340] sm:$0xff]  ;;  %v761_v41 = vld [vmem:[%s3395_s5 + $0x88] sm:$0xff] }
  0x82   :  { %531 = vmatprep.subr.mxu0 %v162_v2  ;;  %602 = vmatprep.subr.mxu1 %v164_v3  ;;  %v746_v39 = vld [vmem:[%s3395_s5 + $0x10] sm:$0xff]  ;;  %v745_v42 = vld [vmem:[%s3395_s5 + $0x8] sm:$0xff]  ;;  %v847_v43 = vld [vmem:[%s3395_s5 + $0x338] sm:$0xff] }
  0x83   :  { %532 = vmatpush2.msra.mxu0 %v161_v4  ;;  %533 = vmatprep.mubr.f32.mxu0 %v2122_v63  ;;  %v760_v44 = vld [vmem:[%s3395_s5 + $0x80] sm:$0xff]  ;;  %v846_v46 = vld [vmem:[%s3395_s5 + $0x330] sm:$0xff]  ;;  %v807_v47 = vld [vmem:[%s3395_s5 + $0x1f8] sm:$0xff] }
  0x84   :  { %603 = vmatpush2.msra.mxu1 %v163_v5  ;;  %604 = vmatprep.mubr.f32.mxu1 %v2122_v63  ;;  %v773_v63 = vld [vmem:[%s3395_s5 + $0xe8] sm:$0xff]  ;;  %v744_v45 = vld [vmem:[%s3395_s5] sm:$0xff]  ;;  %v843_v50 = vld [vmem:[%s3395_s5 + $0x318] sm:$0xff] }
  0x85   :  { %534 = vmatmul.mubr.f32.vlgmr.msra.gmra.mxu0 %v2130_v1  ;;  %605 = vmatmul.mubr.f32.vlgmr.msra.gmra.mxu1 %v2130_v1  ;;  %v772_v1 = vld [vmem:[%s3395_s5 + $0xe0] sm:$0xff]  ;;  %v845_v48 = vld [vmem:[%s3395_s5 + $0x328] sm:$0xff]  ;;  %v842_v51 = vld [vmem:[%s3395_s5 + $0x310] sm:$0xff] }
  0x86   :  { %1462 = vmatprep.subr.mxu0 %v775_v6  ;;  %1083 = vmatprep.subr.mxu1 %v1696_v18  ;;  %v844_v49 = vld [vmem:[%s3395_s5 + $0x320] sm:$0xff]  ;;  %v841_v52 = vld [vmem:[%s3395_s5 + $0x308] sm:$0xff]  ;;  %v867_v55 = vld [vmem:[%s3395_s5 + $0x3d8] sm:$0xff]  ;;  %v287_v6 = vlaneseq }
  0x87   :  { %1463 = vmatpush3.msra.mxu0 %v759_v7  ;;  %1084 = vmatpush1.msra.mxu1 %v855_v19  ;;  %v840_v53 = vld [vmem:[%s3395_s5 + $0x300] sm:$0xff]  ;;  %v866_v56 = vld [vmem:[%s3395_s5 + $0x3d0] sm:$0xff]  ;;  %v865_v57 = vld [vmem:[%s3395_s5 + $0x3c8] sm:$0xff] }
  0x88   :  { %1464 = vmatprep.subr.mxu0 %v774_v8  ;;  %1085 = vmatprep.subr.mxu1 %v1696_v18  ;;  %v868_v54 = vld [vmem:[%s3395_s5 + $0x3e0] sm:$0xff]  ;;  %v863_v59 = vld [vmem:[%s3395_s5 + $0x3b8] sm:$0xff]  ;;  %v862_v60 = vld [vmem:[%s3395_s5 + $0x3b0] sm:$0xff]  ;;  %v2742_v7 = vshrl.u32 %v287_v6, 7 }
  0x89   :  { %1465 = vmatpush3.msra.mxu0 %v758_v9  ;;  %1086 = vmatpush1.msra.mxu1 %v854_v22  ;;  %v864_v58 = vld [vmem:[%s3395_s5 + $0x3c0] sm:$0xff]  ;;  %v861_v61 = vld [vmem:[%s3395_s5 + $0x3a8] sm:$0xff]  ;;  %v859_v0 = vld [vmem:[%s3395_s5 + $0x398] sm:$0xff] }
  0x8a   :  { %1466 = vmatprep.subr.mxu0 %v773_v63  ;;  %1087 = vmatprep.subr.mxu1 %v1696_v18  ;;  %v860_v62 = vld [vmem:[%s3395_s5 + $0x3a0] sm:$0xff]  ;;  %v858_v2 = vld [vmem:[%s3395_s5 + $0x390] sm:$0xff]  ;;  %v857_v3 = vld [vmem:[%s3395_s5 + $0x388] sm:$0xff]  ;;  %v289_v8 = vsub.s32 0, %v2742_v7  ;;  %v293_v9 = vsub.s32 1, %v2742_v7 }
  0x8b   :  { %1467 = vmatpush3.msra.mxu0 %v757_v10  ;;  %1088 = vmatpush1.msra.mxu1 %v853_v25  ;;  %v856_v4 = vld [vmem:[%s3395_s5 + $0x380] sm:$0xff]  ;;  %v682_v5 = vld [vmem:[%s3394_s4 + $0x1f8] sm:$0xff]  ;;  %v301_v10 = vsub.s32 3, %v2742_v7  ;;  %v806_v22 = vld [vmem:[%s3395_s5 + $0x1f0] sm:$0xff] }
  0x8c   :  { %1468 = vmatprep.subr.mxu0 %v772_v1  ;;  %1089 = vmatprep.subr.mxu1 %v1696_v18  ;;  %v2749_v63 = vld [vmem:[%s3393_s3] sm:$0xff]  ;;  %v789_v25 = vld [vmem:[%s3395_s5 + $0x168] sm:$0xff] }
  0x8d   :  { %1469 = vmatpush3.msra.mxu0 %v756_v11  ;;  %1090 = vmatpush1.msra.mxu1 %v852_v28  ;;  %v290_v1 = vrot.slane %v2749_v63, %v289_v8  ;;  %v294_v11 = vrot.slane %v2749_v63, %v293_v9  ;;  %v803_v28 = vld [vmem:[%s3395_s5 + $0x1d8] sm:$0xff]  ;;  %v817_v6 = vld [vmem:[%s3395_s5 + $0x248] sm:$0xff]  ;;  %v832_v8 = vld [vmem:[%s3395_s5 + $0x2c0] sm:$0xff] }
  0x8e   :  { %1470 = vmatprep.subr.mxu0 %v771_v12  ;;  %1091 = vmatprep.subr.mxu1 %v1696_v18  ;;  %v816_v9 = vld [vmem:[%s3395_s5 + $0x240] sm:$0xff] }
  0x8f   :  { %1471 = vmatpush3.msra.mxu0 %v755_v13  ;;  %1092 = vmatpush1.msra.mxu1 %v851_v31  ;;  %v786_v31 = vld [vmem:[%s3395_s5 + $0x150] sm:$0xff] }
  0x90   :  { %1472 = vmatprep.subr.mxu0 %v770_v14  ;;  %1093 = vmatprep.subr.mxu1 %v1696_v18  ;;  %v302_v14 = vrot.slane %v2749_v63, %v301_v10  ;;  %v831_v10 = vld [vmem:[%s3395_s5 + $0x2b8] sm:$0xff] }
  0x91   :  { %1473 = vmatpush3.msra.mxu0 %v754_v15  ;;  %1094 = vmatpush1.msra.mxu1 %v850_v34  ;;  %v800_v34 = vld [vmem:[%s3395_s5 + $0x1c0] sm:$0xff] }
  0x92   :  { %1474 = vmatprep.subr.mxu0 %v769_v16  ;;  %1095 = vmatprep.subr.mxu1 %v1696_v18 }
  0x93   :  { %1475 = vmatpush3.msra.mxu0 %v753_v17  ;;  %1096 = vmatpush1.msra.mxu1 %v849_v37  ;;  %v783_v37 = vld [vmem:[%s3395_s5 + $0x138] sm:$0xff] }
  0x94   :  { %1476 = vmatprep.subr.mxu0 %v768_v20  ;;  %1097 = vmatprep.subr.mxu1 %v1696_v18  ;;  %v791_v20 = vld [vmem:[%s3395_s5 + $0x178] sm:$0xff] }
  0x95   :  { %1477 = vmatpush3.msra.mxu0 %v752_v21  ;;  %1098 = vmatpush1.msra.mxu1 %v848_v40  ;;  %v797_v40 = vld [vmem:[%s3395_s5 + $0x1a8] sm:$0xff] }
  0x96   :  { %1478 = vmatprep.subr.mxu0 %v767_v23  ;;  %1099 = vmatprep.subr.mxu1 %v1696_v18  ;;  %v790_v23 = vld [vmem:[%s3395_s5 + $0x170] sm:$0xff] }
  0x97   :  { %1479 = vmatpush3.msra.mxu0 %v751_v24  ;;  %1100 = vmatpush1.msra.mxu1 %v847_v43  ;;  %v805_v24 = vld [vmem:[%s3395_s5 + $0x1e8] sm:$0xff]  ;;  %v780_v43 = vld [vmem:[%s3395_s5 + $0x120] sm:$0xff] }
  0x98   :  { %1480 = vmatprep.subr.mxu0 %v766_v26  ;;  %1101 = vmatprep.subr.mxu1 %v1696_v18  ;;  %v804_v26 = vld [vmem:[%s3395_s5 + $0x1e0] sm:$0xff] }
  0x99   :  { %1481 = vmatpush3.msra.mxu0 %v750_v27  ;;  %1102 = vmatpush1.msra.mxu1 %v846_v46  ;;  %v788_v27 = vld [vmem:[%s3395_s5 + $0x160] sm:$0xff]  ;;  %v779_v46 = vld [vmem:[%s3395_s5 + $0x118] sm:$0xff] }
  0x9a   :  { %1482 = vmatprep.subr.mxu0 %v765_v29  ;;  %1103 = vmatprep.subr.mxu1 %v1696_v18  ;;  %v787_v29 = vld [vmem:[%s3395_s5 + $0x158] sm:$0xff] }
  0x9b   :  { %1483 = vmatpush3.msra.mxu0 %v749_v30  ;;  %1104 = vmatpush1.msra.mxu1 %v845_v48  ;;  %v802_v30 = vld [vmem:[%s3395_s5 + $0x1d0] sm:$0xff] }
  0x9c   :  { %1484 = vmatprep.subr.mxu0 %v764_v32  ;;  %1105 = vmatprep.subr.mxu1 %v1696_v18  ;;  %v801_v32 = vld [vmem:[%s3395_s5 + $0x1c8] sm:$0xff]  ;;  %v778_v48 = vld [vmem:[%s3395_s5 + $0x110] sm:$0xff] }
  0x9d   :  { %1485 = vmatpush3.msra.mxu0 %v748_v33  ;;  %1106 = vmatpush1.msra.mxu1 %v844_v49  ;;  %v785_v33 = vld [vmem:[%s3395_s5 + $0x148] sm:$0xff] }
  0x9e   :  { %1486 = vmatprep.subr.mxu0 %v763_v35  ;;  %1107 = vmatprep.subr.mxu1 %v1696_v18  ;;  %v784_v35 = vld [vmem:[%s3395_s5 + $0x140] sm:$0xff]  ;;  %v793_v49 = vld [vmem:[%s3395_s5 + $0x188] sm:$0xff] }
  0x9f   :  { %1487 = vmatpush3.msra.mxu0 %v747_v36  ;;  %1108 = vmatpush1.msra.mxu1 %v843_v50  ;;  %v799_v36 = vld [vmem:[%s3395_s5 + $0x1b8] sm:$0xff] }
  0xa0   :  { %1488 = vmatprep.subr.mxu0 %v762_v38  ;;  %1109 = vmatprep.subr.mxu1 %v1696_v18  ;;  %v798_v38 = vld [vmem:[%s3395_s5 + $0x1b0] sm:$0xff] }
  0xa1   :  { %1489 = vmatpush3.msra.mxu0 %v746_v39  ;;  %1110 = vmatpush1.msra.mxu1 %v842_v51  ;;  %v782_v39 = vld [vmem:[%s3395_s5 + $0x130] sm:$0xff]  ;;  %v777_v51 = vld [vmem:[%s3395_s5 + $0x108] sm:$0xff] }
  0xa2   :  { %1490 = vmatprep.subr.mxu0 %v761_v41  ;;  %1111 = vmatprep.subr.mxu1 %v1696_v18  ;;  %v781_v41 = vld [vmem:[%s3395_s5 + $0x128] sm:$0xff] }
  0xa3   :  { %1491 = vmatpush3.msra.mxu0 %v745_v42  ;;  %1112 = vmatpush1.msra.mxu1 %v841_v52  ;;  %v796_v42 = vld [vmem:[%s3395_s5 + $0x1a0] sm:$0xff] }
  0xa4   :  { %1492 = vmatprep.subr.mxu0 %v760_v44  ;;  %1113 = vmatprep.subr.mxu1 %v1696_v18  ;;  %v795_v44 = vld [vmem:[%s3395_s5 + $0x198] sm:$0xff]  ;;  %v792_v52 = vld [vmem:[%s3395_s5 + $0x180] sm:$0xff] }
  0xa5   :  { %1493 = vmatpush3.msra.mxu0 %v744_v45  ;;  %1114 = vmatpush1.msra.mxu1 %v840_v53  ;;  %v297_v45 = vsub.s32 2, %v2742_v7  ;;  %v776_v53 = vld [vmem:[%s3395_s5 + $0x100] sm:$0xff] }
  0xa6   :  { %1497 = vmatprep.subr.mxu0 %v807_v47  ;;  %1121 = vmatprep.subr.mxu1 %v1696_v18  ;;  %v794_v47 = vld [vmem:[%s3395_s5 + $0x190] sm:$0xff] }
  0xa7   :  { %1122 = vmatpush2.msra.mxu1 %v868_v54  ;;  %v298_v50 = vrot.slane %v2749_v63, %v297_v45  ;;  %v839_v54 = vld [vmem:[%s3395_s5 + $0x2f8] sm:$0xff]  ;;  %v633_v45 = vld [vmem:[%s3394_s4 + $0x70] sm:$0xff] }
  0xa8   :  { %1123 = vmatprep.subr.mxu1 %v1696_v18 }
  0xa9   :  { %1124 = vmatpush2.msra.mxu1 %v867_v55 }
  0xaa   :  { %1125 = vmatprep.subr.mxu1 %v1696_v18 }
  0xab   :  { %1126 = vmatpush2.msra.mxu1 %v866_v56  ;;  %v823_v56 = vld [vmem:[%s3395_s5 + $0x278] sm:$0xff] }
  0xac   :  { %1127 = vmatprep.subr.mxu1 %v1696_v18 }
  0xad   :  { %1128 = vmatpush2.msra.mxu1 %v865_v57  ;;  %v838_v57 = vld [vmem:[%s3395_s5 + $0x2f0] sm:$0xff] }
  0xae   :  { %1129 = vmatprep.subr.mxu1 %v1696_v18 }
  0xaf   :  { %1130 = vmatpush2.msra.mxu1 %v864_v58  ;;  %v822_v58 = vld [vmem:[%s3395_s5 + $0x270] sm:$0xff] }
  0xb0   :  { %1131 = vmatprep.subr.mxu1 %v1696_v18 }
  0xb1   :  { %1132 = vmatpush2.msra.mxu1 %v863_v59  ;;  %v837_v59 = vld [vmem:[%s3395_s5 + $0x2e8] sm:$0xff] }
  0xb2   :  { %1133 = vmatprep.subr.mxu1 %v1696_v18 }
  0xb3   :  { %1134 = vmatpush2.msra.mxu1 %v862_v60  ;;  %v821_v60 = vld [vmem:[%s3395_s5 + $0x268] sm:$0xff] }
  0xb4   :  { %1135 = vmatprep.subr.mxu1 %v1696_v18 }
  0xb5   :  { %1136 = vmatpush2.msra.mxu1 %v861_v61  ;;  %v836_v61 = vld [vmem:[%s3395_s5 + $0x2e0] sm:$0xff] }
  0xb6   :  { %1137 = vmatprep.subr.mxu1 %v1696_v18 }
  0xb7   :  { %1138 = vmatpush2.msra.mxu1 %v860_v62  ;;  %v820_v62 = vld [vmem:[%s3395_s5 + $0x260] sm:$0xff] }
  0xb8   :  { %1139 = vmatprep.subr.mxu1 %v1696_v18 }
  0xb9   :  { %1140 = vmatpush2.msra.mxu1 %v859_v0  ;;  %v835_v0 = vld [vmem:[%s3395_s5 + $0x2d8] sm:$0xff] }
  0xba   :  { %1141 = vmatprep.subr.mxu1 %v1696_v18 }
  0xbb   :  { %1142 = vmatpush2.msra.mxu1 %v858_v2  ;;  %v819_v2 = vld [vmem:[%s3395_s5 + $0x258] sm:$0xff] }
  0xbc   :  { %1143 = vmatprep.subr.mxu1 %v1696_v18 }
  0xbd   :  { %1144 = vmatpush2.msra.mxu1 %v857_v3  ;;  %v834_v3 = vld [vmem:[%s3395_s5 + $0x2d0] sm:$0xff] }
  0xbe   :  { %1145 = vmatprep.subr.mxu1 %v1696_v18 }
  0xbf   :  { %1146 = vmatpush2.msra.mxu1 %v856_v4  ;;  %v818_v4 = vld [vmem:[%s3395_s5 + $0x250] sm:$0xff] }
  0xc0   :  { %1602 = vmatprep.subr.mxu1 %v682_v5  ;;  %v833_v5 = vld [vmem:[%s3395_s5 + $0x2c8] sm:$0xff] }
 0x103   :  { %v393_v12 = vpop.f32.mrf.mxu0  ;;  %v2754_v13 = vpop.f32.mrf.mxu1 }
 0x104   :  { %v394_v15 = vadd.f32 %v393_v12, %v290_v1  ;;  %v465_v55 = vadd.f32 %v2754_v13, %v298_v50  ;;  %v815_v1 = vld [vmem:[%s3395_s5 + $0x238] sm:$0xff]  ;;  %v814_v12 = vld [vmem:[%s3395_s5 + $0x230] sm:$0xff]  ;;  %v829_v13 = vld [vmem:[%s3395_s5 + $0x2a8] sm:$0xff] }
 0x105   :  { %v395_v16 = vpop.f32.mrf.mxu0  ;;  %v466_v17 = vpop.f32.mrf.mxu1  ;;  %v664_v50 = vld [vmem:[%s3394_s4 + $0x168] sm:$0xff] }
 0x106   :  { %v396_v19 = vadd.f32 %v395_v16, %v294_v11  ;;  %v467_v21 = vadd.f32 %v466_v17, %v302_v14  ;;  %v830_v11 = vld [vmem:[%s3395_s5 + $0x2b0] sm:$0xff]  ;;  %v813_v14 = vld [vmem:[%s3395_s5 + $0x228] sm:$0xff]  ;;  %v812_v16 = vld [vmem:[%s3395_s5 + $0x220] sm:$0xff] }
 0x107   :  { %v827_v17 = vld [vmem:[%s3395_s5 + $0x298] sm:$0xff] }
 0x108   :  { %937 = vmatprep.mubr.f32.mxu0 %v396_v19  ;;  %v811_v19 = vld [vmem:[%s3395_s5 + $0x218] sm:$0xff] }
 0x109   :  { %938 = vmatmul.mubr.f32.vlgmr.msra.gmra.mxu0 %v394_v15  ;;  %v828_v15 = vld [vmem:[%s3395_s5 + $0x2a0] sm:$0xff] }
 0x10a   :  { %1498 = vmatpush3.msra.mxu0 %v791_v20  ;;  %1007 = vmatprep.mubr.f32.mxu0 %v467_v21  ;;  %v305_v20 = vsub.s32 4, %v2742_v7  ;;  %v826_v21 = vld [vmem:[%s3395_s5 + $0x290] sm:$0xff] }
 0x10b   :  { %1499 = vmatprep.subr.mxu0 %v806_v22  ;;  %v309_v22 = vsub.s32 5, %v2742_v7 }
 0x10c   :  { %1500 = vmatpush3.msra.mxu0 %v790_v23  ;;  %v317_v23 = vsub.s32 7, %v2742_v7 }
 0x10d   :  { %1501 = vmatprep.subr.mxu0 %v805_v24  ;;  %v313_v24 = vsub.s32 6, %v2742_v7 }
 0x10e   :  { %1502 = vmatpush3.msra.mxu0 %v789_v25  ;;  %v810_v25 = vld [vmem:[%s3395_s5 + $0x210] sm:$0xff]  ;;  %v318_v7 = vrot.slane %v2749_v63, %v317_v23  ;;  %v671_v23 = vld [vmem:[%s3394_s4 + $0x1a0] sm:$0xff] }
 0x10f   :  { %1503 = vmatprep.subr.mxu0 %v804_v26  ;;  %v825_v26 = vld [vmem:[%s3395_s5 + $0x288] sm:$0xff] }
 0x110   :  { %1504 = vmatpush3.msra.mxu0 %v788_v27  ;;  %v306_v27 = vrot.slane %v2749_v63, %v305_v20  ;;  %v624_v20 = vld [vmem:[%s3394_s4 + $0x28] sm:$0xff] }
 0x111   :  { %1505 = vmatprep.subr.mxu0 %v803_v28  ;;  %v809_v28 = vld [vmem:[%s3395_s5 + $0x208] sm:$0xff] }
 0x112   :  { %1506 = vmatpush3.msra.mxu0 %v787_v29  ;;  %v310_v29 = vrot.slane %v2749_v63, %v309_v22  ;;  %v639_v22 = vld [vmem:[%s3394_s4 + $0xa0] sm:$0xff] }
 0x113   :  { %1507 = vmatprep.subr.mxu0 %v802_v30  ;;  %v824_v30 = vld [vmem:[%s3395_s5 + $0x280] sm:$0xff] }
 0x114   :  { %1508 = vmatpush3.msra.mxu0 %v786_v31 }
 0x115   :  { %1509 = vmatprep.subr.mxu0 %v801_v32  ;;  %v314_v32 = vrot.slane %v2749_v63, %v313_v24  ;;  %v623_v24 = vld [vmem:[%s3394_s4 + $0x20] sm:$0xff] }
 0x116   :  { %1510 = vmatpush3.msra.mxu0 %v785_v33 }
 0x117   :  { %1511 = vmatprep.subr.mxu0 %v800_v34  ;;  %v808_v34 = vld [vmem:[%s3395_s5 + $0x200] sm:$0xff] }
 0x118   :  { %1512 = vmatpush3.msra.mxu0 %v784_v35  ;;  %v650_v35 = vld [vmem:[%s3394_s4 + $0xf8] sm:$0xff] }
 0x119   :  { %1513 = vmatprep.subr.mxu0 %v799_v36 }
 0x11a   :  { %1514 = vmatpush3.msra.mxu0 %v783_v37 }
 0x11b   :  { %1515 = vmatprep.subr.mxu0 %v798_v38 }
 0x11c   :  { %1516 = vmatpush3.msra.mxu0 %v782_v39 }
 0x11d   :  { %1517 = vmatprep.subr.mxu0 %v797_v40 }
 0x11e   :  { %1518 = vmatpush3.msra.mxu0 %v781_v41  ;;  %v634_v41 = vld [vmem:[%s3394_s4 + $0x78] sm:$0xff] }
 0x11f   :  { %1519 = vmatprep.subr.mxu0 %v796_v42  ;;  %v666_v42 = vld [vmem:[%s3394_s4 + $0x178] sm:$0xff] }
 0x120   :  { %1520 = vmatpush3.msra.mxu0 %v780_v43  ;;  %v649_v43 = vld [vmem:[%s3394_s4 + $0xf0] sm:$0xff] }
 0x121   :  { %1521 = vmatprep.subr.mxu0 %v795_v44  ;;  %v681_v44 = vld [vmem:[%s3394_s4 + $0x1f0] sm:$0xff] }
 0x122   :  { %1522 = vmatpush3.msra.mxu0 %v779_v46  ;;  %v665_v46 = vld [vmem:[%s3394_s4 + $0x170] sm:$0xff] }
 0x123   :  { %1523 = vmatprep.subr.mxu0 %v794_v47  ;;  %v648_v47 = vld [vmem:[%s3394_s4 + $0xe8] sm:$0xff] }
 0x124   :  { %1524 = vmatpush3.msra.mxu0 %v778_v48  ;;  %v680_v48 = vld [vmem:[%s3394_s4 + $0x1e8] sm:$0xff] }
 0x125   :  { %1525 = vmatprep.subr.mxu0 %v793_v49  ;;  %v632_v49 = vld [vmem:[%s3394_s4 + $0x68] sm:$0xff] }
 0x126   :  { %1526 = vmatpush3.msra.mxu0 %v777_v51  ;;  %v647_v51 = vld [vmem:[%s3394_s4 + $0xe0] sm:$0xff] }
 0x127   :  { %1527 = vmatprep.subr.mxu0 %v792_v52  ;;  %v679_v52 = vld [vmem:[%s3394_s4 + $0x1e0] sm:$0xff] }
 0x128   :  { %1528 = vmatpush3.msra.mxu0 %v776_v53  ;;  %v631_v53 = vld [vmem:[%s3394_s4 + $0x60] sm:$0xff] }
 0x129   :  { %1008 = vmatmul.mubr.f32.vlgmr.msra.gmra.mxu0 %v465_v55  ;;  %1532 = vmatprep.subr.mxu0 %v839_v54  ;;  %v663_v54 = vld [vmem:[%s3394_s4 + $0x160] sm:$0xff]  ;;  %v646_v55 = vld [vmem:[%s3394_s4 + $0xd8] sm:$0xff] }
 0x12a   :  { %1533 = vmatpush3.msra.mxu0 %v823_v56  ;;  %v678_v56 = vld [vmem:[%s3394_s4 + $0x1d8] sm:$0xff] }
 0x12b   :  { %1534 = vmatprep.subr.mxu0 %v838_v57  ;;  %v630_v57 = vld [vmem:[%s3394_s4 + $0x58] sm:$0xff] }
 0x12c   :  { %1535 = vmatpush3.msra.mxu0 %v822_v58  ;;  %v662_v58 = vld [vmem:[%s3394_s4 + $0x158] sm:$0xff] }
 0x12d   :  { %1536 = vmatprep.subr.mxu0 %v837_v59  ;;  %v645_v59 = vld [vmem:[%s3394_s4 + $0xd0] sm:$0xff] }
 0x12e   :  { %1537 = vmatpush3.msra.mxu0 %v821_v60  ;;  %v677_v60 = vld [vmem:[%s3394_s4 + $0x1d0] sm:$0xff] }
 0x12f   :  { %1538 = vmatprep.subr.mxu0 %v836_v61  ;;  %v629_v61 = vld [vmem:[%s3394_s4 + $0x50] sm:$0xff] }
 0x130   :  { %1539 = vmatpush3.msra.mxu0 %v820_v62  ;;  %v661_v62 = vld [vmem:[%s3394_s4 + $0x150] sm:$0xff] }
 0x131   :  { %1540 = vmatprep.subr.mxu0 %v835_v0  ;;  %v644_v0 = vld [vmem:[%s3394_s4 + $0xc8] sm:$0xff] }
 0x132   :  { %1541 = vmatpush3.msra.mxu0 %v819_v2  ;;  %v676_v2 = vld [vmem:[%s3394_s4 + $0x1c8] sm:$0xff] }
 0x133   :  { %1542 = vmatprep.subr.mxu0 %v834_v3  ;;  %v628_v3 = vld [vmem:[%s3394_s4 + $0x48] sm:$0xff] }
 0x134   :  { %1543 = vmatpush3.msra.mxu0 %v818_v4  ;;  %v660_v4 = vld [vmem:[%s3394_s4 + $0x148] sm:$0xff] }
 0x135   :  { %1544 = vmatprep.subr.mxu0 %v833_v5  ;;  %v643_v5 = vld [vmem:[%s3394_s4 + $0xc0] sm:$0xff] }
 0x136   :  { %1545 = vmatpush3.msra.mxu0 %v817_v6  ;;  %v675_v6 = vld [vmem:[%s3394_s4 + $0x1c0] sm:$0xff] }
 0x137   :  { %1546 = vmatprep.subr.mxu0 %v832_v8  ;;  %v627_v8 = vld [vmem:[%s3394_s4 + $0x40] sm:$0xff] }
 0x138   :  { %1547 = vmatpush3.msra.mxu0 %v816_v9  ;;  %v659_v9 = vld [vmem:[%s3394_s4 + $0x140] sm:$0xff] }
 0x139   :  { %1548 = vmatprep.subr.mxu0 %v831_v10  ;;  %v642_v10 = vld [vmem:[%s3394_s4 + $0xb8] sm:$0xff] }
 0x13a   :  { %1549 = vmatpush3.msra.mxu0 %v815_v1  ;;  %v674_v1 = vld [vmem:[%s3394_s4 + $0x1b8] sm:$0xff] }
 0x13b   :  { %1550 = vmatprep.subr.mxu0 %v830_v11  ;;  %v626_v11 = vld [vmem:[%s3394_s4 + $0x38] sm:$0xff] }
 0x13c   :  { %1551 = vmatpush3.msra.mxu0 %v814_v12  ;;  %v658_v12 = vld [vmem:[%s3394_s4 + $0x138] sm:$0xff] }
 0x13d   :  { %1552 = vmatprep.subr.mxu0 %v829_v13  ;;  %v641_v13 = vld [vmem:[%s3394_s4 + $0xb0] sm:$0xff] }
 0x13e   :  { %1553 = vmatpush3.msra.mxu0 %v813_v14  ;;  %v673_v14 = vld [vmem:[%s3394_s4 + $0x1b0] sm:$0xff] }
 0x13f   :  { %1554 = vmatprep.subr.mxu0 %v828_v15  ;;  %v625_v15 = vld [vmem:[%s3394_s4 + $0x30] sm:$0xff] }
 0x140   :  { %1555 = vmatpush3.msra.mxu0 %v812_v16  ;;  %v657_v16 = vld [vmem:[%s3394_s4 + $0x130] sm:$0xff] }
 0x141   :  { %1556 = vmatprep.subr.mxu0 %v827_v17  ;;  %v640_v17 = vld [vmem:[%s3394_s4 + $0xa8] sm:$0xff] }
 0x142   :  { %1557 = vmatpush3.msra.mxu0 %v811_v19  ;;  %v672_v19 = vld [vmem:[%s3394_s4 + $0x1a8] sm:$0xff] }
 0x143   :  { %1558 = vmatprep.subr.mxu0 %v826_v21  ;;  %v656_v21 = vld [vmem:[%s3394_s4 + $0x128] sm:$0xff] }
 0x144   :  { %1559 = vmatpush3.msra.mxu0 %v810_v25  ;;  %v655_v25 = vld [vmem:[%s3394_s4 + $0x120] sm:$0xff] }
 0x145   :  { %v535_v31 = vpop.f32.mrf.mxu0  ;;  %v606_v33 = vpop.f32.mrf.mxu1  ;;  %1560 = vmatprep.subr.mxu0 %v825_v26  ;;  %v638_v26 = vld [vmem:[%s3394_s4 + $0x98] sm:$0xff] }
 0x146   :  { %1561 = vmatpush3.msra.mxu0 %v809_v28  ;;  %v536_v36 = vadd.f32 %v535_v31, %v306_v27  ;;  %v607_v63 = vadd.f32 %v606_v33, %v314_v32  ;;  %v670_v27 = vld [vmem:[%s3394_s4 + $0x198] sm:$0xff]  ;;  %v621_v31 = vld [vmem:[%s3394_s4 + $0x10] sm:$0xff]  ;;  %v636_v33 = vld [vmem:[%s3394_s4 + $0x88] sm:$0xff] }
 0x147   :  { %v537_v37 = vpop.f32.mrf.mxu0  ;;  %v608_v38 = vpop.f32.mrf.mxu1  ;;  %1562 = vmatprep.subr.mxu0 %v824_v30  ;;  %v622_v28 = vld [vmem:[%s3394_s4 + $0x18] sm:$0xff]  ;;  %v669_v30 = vld [vmem:[%s3394_s4 + $0x190] sm:$0xff] }
 0x148   :  { %v538_v39 = vadd.f32 %v537_v37, %v310_v29  ;;  %v609_v40 = vadd.f32 %v608_v38, %v318_v7  ;;  %1563 = vmatpush3.msra.mxu0 %v808_v34  ;;  %v654_v29 = vld [vmem:[%s3394_s4 + $0x118] sm:$0xff]  ;;  %v637_v7 = vld [vmem:[%s3394_s4 + $0x90] sm:$0xff]  ;;  %v668_v34 = vld [vmem:[%s3394_s4 + $0x188] sm:$0xff] }
 0x149   :  { %1567 = vmatprep.subr.mxu0 %v650_v35  ;;  %v653_v32 = vld [vmem:[%s3394_s4 + $0x110] sm:$0xff]  ;;  %v620_v35 = vld [vmem:[%s3394_s4 + $0x8] sm:$0xff]  ;;  %v635_v37 = vld [vmem:[%s3394_s4 + $0x80] sm:$0xff] }
 0x14a   :  { %1077 = vmatprep.mubr.f32.mxu0 %v538_v39  ;;  %1459 = vmatprep.mubr.msk.f32.mxu1 %vm869_vm0, %v609_v40  ;;  %v667_v38 = vld [vmem:[%s3394_s4 + $0x180] sm:$0xff]  ;;  %v612_v40 = vld [vmem:[%s3391_s1 + $0x8] sm:$0xff] }
 0x14b   :  { %1078 = vmatmul.mubr.f32.vlgmr.msra.gmra.mxu0 %v536_v36  ;;  %1148 = vmatmul.mubr.f32.vlgmr.msra.gmra.mxu1 %v607_v63  ;;  %v652_v36 = vld [vmem:[%s3394_s4 + $0x108] sm:$0xff]  ;;  %v619_v39 = vld [vmem:[%s3394_s4] sm:$0xff] }
 0x14c   :  { %1568 = vmatpush3.msra.mxu0 %v634_v41  ;;  %1603 = vmatpush3.msra.mxu1 %v666_v42  ;;  %v651_v63 = vld [vmem:[%s3394_s4 + $0x100] sm:$0xff]  ;;  %v614_v41 = vld [vmem:[%s3391_s1 + $0x18] sm:$0xff] }
 0x14d   :  { %1569 = vmatprep.subr.mxu0 %v649_v43  ;;  %1604 = vmatprep.subr.mxu1 %v681_v44  ;;  %v611_v42 = vld [vmem:[%s3391_s1] sm:$0xff]  ;;  %v613_v43 = vld [vmem:[%s3391_s1 + $0x10] sm:$0xff]  ;;  %v714_v44 = vld [vmem:[%s3394_s4 + $0x2f8] sm:$0xff] }
 0x14e   :  { %1570 = vmatpush3.msra.mxu0 %v633_v45  ;;  %1605 = vmatpush3.msra.mxu1 %v665_v46  ;;  %v698_v45 = vld [vmem:[%s3394_s4 + $0x278] sm:$0xff] }
 0x14f   :  { %1571 = vmatprep.subr.mxu0 %v648_v47  ;;  %1606 = vmatprep.subr.mxu1 %v680_v48  ;;  %v730_v46 = vld [vmem:[%s3394_s4 + $0x378] sm:$0xff]  ;;  %v713_v47 = vld [vmem:[%s3394_s4 + $0x2f0] sm:$0xff] }
 0x150   :  { %1572 = vmatpush3.msra.mxu0 %v632_v49  ;;  %1607 = vmatpush3.msra.mxu1 %v664_v50  ;;  %v697_v48 = vld [vmem:[%s3394_s4 + $0x270] sm:$0xff]  ;;  %v712_v50 = vld [vmem:[%s3394_s4 + $0x2e8] sm:$0xff] }
 0x151   :  { %1573 = vmatprep.subr.mxu0 %v647_v51  ;;  %1608 = vmatprep.subr.mxu1 %v679_v52  ;;  %v729_v49 = vld [vmem:[%s3394_s4 + $0x370] sm:$0xff]  ;;  %v696_v51 = vld [vmem:[%s3394_s4 + $0x268] sm:$0xff] }
 0x152   :  { %1574 = vmatpush3.msra.mxu0 %v631_v53  ;;  %1609 = vmatpush3.msra.mxu1 %v663_v54  ;;  %v728_v52 = vld [vmem:[%s3394_s4 + $0x368] sm:$0xff]  ;;  %v711_v53 = vld [vmem:[%s3394_s4 + $0x2e0] sm:$0xff] }
 0x153   :  { %1575 = vmatprep.subr.mxu0 %v646_v55  ;;  %1610 = vmatprep.subr.mxu1 %v678_v56  ;;  %v695_v54 = vld [vmem:[%s3394_s4 + $0x260] sm:$0xff]  ;;  %v710_v56 = vld [vmem:[%s3394_s4 + $0x2d8] sm:$0xff] }
 0x154   :  { %1576 = vmatpush3.msra.mxu0 %v630_v57  ;;  %1611 = vmatpush3.msra.mxu1 %v662_v58  ;;  %v727_v55 = vld [vmem:[%s3394_s4 + $0x360] sm:$0xff]  ;;  %v694_v57 = vld [vmem:[%s3394_s4 + $0x258] sm:$0xff] }
 0x155   :  { %1577 = vmatprep.subr.mxu0 %v645_v59  ;;  %1612 = vmatprep.subr.mxu1 %v677_v60  ;;  %v726_v58 = vld [vmem:[%s3394_s4 + $0x358] sm:$0xff]  ;;  %v709_v59 = vld [vmem:[%s3394_s4 + $0x2d0] sm:$0xff] }
 0x156   :  { %1578 = vmatpush3.msra.mxu0 %v629_v61  ;;  %1613 = vmatpush3.msra.mxu1 %v661_v62  ;;  %v693_v60 = vld [vmem:[%s3394_s4 + $0x250] sm:$0xff]  ;;  %v708_v62 = vld [vmem:[%s3394_s4 + $0x2c8] sm:$0xff] }
 0x157   :  { %1579 = vmatprep.subr.mxu0 %v644_v0  ;;  %1614 = vmatprep.subr.mxu1 %v676_v2  ;;  %v725_v61 = vld [vmem:[%s3394_s4 + $0x350] sm:$0xff]  ;;  %v692_v0 = vld [vmem:[%s3394_s4 + $0x248] sm:$0xff] }
 0x158   :  { %1580 = vmatpush3.msra.mxu0 %v628_v3  ;;  %1615 = vmatpush3.msra.mxu1 %v660_v4  ;;  %v724_v2 = vld [vmem:[%s3394_s4 + $0x348] sm:$0xff]  ;;  %v707_v3 = vld [vmem:[%s3394_s4 + $0x2c0] sm:$0xff] }
 0x159   :  { %1581 = vmatprep.subr.mxu0 %v643_v5  ;;  %1616 = vmatprep.subr.mxu1 %v675_v6  ;;  %v691_v4 = vld [vmem:[%s3394_s4 + $0x240] sm:$0xff]  ;;  %v706_v6 = vld [vmem:[%s3394_s4 + $0x2b8] sm:$0xff] }
 0x15a   :  { %1582 = vmatpush3.msra.mxu0 %v627_v8  ;;  %1617 = vmatpush3.msra.mxu1 %v659_v9  ;;  %v723_v5 = vld [vmem:[%s3394_s4 + $0x340] sm:$0xff]  ;;  %v690_v8 = vld [vmem:[%s3394_s4 + $0x238] sm:$0xff] }
 0x15b   :  { %1583 = vmatprep.subr.mxu0 %v642_v10  ;;  %1618 = vmatprep.subr.mxu1 %v674_v1  ;;  %v722_v9 = vld [vmem:[%s3394_s4 + $0x338] sm:$0xff]  ;;  %v705_v10 = vld [vmem:[%s3394_s4 + $0x2b0] sm:$0xff] }
 0x15c   :  { %1584 = vmatpush3.msra.mxu0 %v626_v11  ;;  %1619 = vmatpush3.msra.mxu1 %v658_v12  ;;  %v689_v1 = vld [vmem:[%s3394_s4 + $0x230] sm:$0xff]  ;;  %v704_v12 = vld [vmem:[%s3394_s4 + $0x2a8] sm:$0xff] }
 0x15d   :  { %1585 = vmatprep.subr.mxu0 %v641_v13  ;;  %1620 = vmatprep.subr.mxu1 %v673_v14  ;;  %v721_v11 = vld [vmem:[%s3394_s4 + $0x330] sm:$0xff]  ;;  %v688_v13 = vld [vmem:[%s3394_s4 + $0x228] sm:$0xff] }
 0x15e   :  { %1586 = vmatpush3.msra.mxu0 %v625_v15  ;;  %1621 = vmatpush3.msra.mxu1 %v657_v16  ;;  %v720_v14 = vld [vmem:[%s3394_s4 + $0x328] sm:$0xff]  ;;  %v703_v15 = vld [vmem:[%s3394_s4 + $0x2a0] sm:$0xff] }
 0x15f   :  { %1587 = vmatprep.subr.mxu0 %v640_v17  ;;  %1622 = vmatprep.subr.mxu1 %v672_v19  ;;  %v687_v16 = vld [vmem:[%s3394_s4 + $0x220] sm:$0xff]  ;;  %v702_v19 = vld [vmem:[%s3394_s4 + $0x298] sm:$0xff] }
 0x160   :  { %1588 = vmatpush3.msra.mxu0 %v624_v20  ;;  %1623 = vmatpush3.msra.mxu1 %v656_v21  ;;  %v719_v17 = vld [vmem:[%s3394_s4 + $0x320] sm:$0xff]  ;;  %v686_v20 = vld [vmem:[%s3394_s4 + $0x218] sm:$0xff] }
 0x161   :  { %1589 = vmatprep.subr.mxu0 %v639_v22  ;;  %1624 = vmatprep.subr.mxu1 %v671_v23  ;;  %v718_v21 = vld [vmem:[%s3394_s4 + $0x318] sm:$0xff]  ;;  %v701_v22 = vld [vmem:[%s3394_s4 + $0x290] sm:$0xff] }
 0x162   :  { %1590 = vmatpush3.msra.mxu0 %v623_v24  ;;  %1625 = vmatpush3.msra.mxu1 %v655_v25  ;;  %v685_v23 = vld [vmem:[%s3394_s4 + $0x210] sm:$0xff]  ;;  %v700_v25 = vld [vmem:[%s3394_s4 + $0x288] sm:$0xff] }
 0x163   :  { %1591 = vmatprep.subr.mxu0 %v638_v26  ;;  %1626 = vmatprep.subr.mxu1 %v670_v27  ;;  %v717_v24 = vld [vmem:[%s3394_s4 + $0x310] sm:$0xff]  ;;  %v684_v26 = vld [vmem:[%s3394_s4 + $0x208] sm:$0xff] }
 0x164   :  { %1592 = vmatpush3.msra.mxu0 %v622_v28  ;;  %1627 = vmatpush3.msra.mxu1 %v654_v29  ;;  %v716_v27 = vld [vmem:[%s3394_s4 + $0x308] sm:$0xff]  ;;  %v699_v28 = vld [vmem:[%s3394_s4 + $0x280] sm:$0xff] }
 0x165   :  { %1593 = vmatprep.subr.mxu0 %v637_v7  ;;  %1628 = vmatprep.subr.mxu1 %v669_v30  ;;  %v683_v29 = vld [vmem:[%s3394_s4 + $0x200] sm:$0xff]  ;;  %v616_v7 = vld [vmem:[%s3391_s1 + $0x28] sm:$0xff] }
 0x166   :  { %1594 = vmatpush3.msra.mxu0 %v621_v31  ;;  %1629 = vmatpush3.msra.mxu1 %v653_v32  ;;  %v715_v30 = vld [vmem:[%s3394_s4 + $0x300] sm:$0xff]  ;;  %v618_v32 = vld [vmem:[%s3391_s1 + $0x38] sm:$0xff] }
 0x167   :  { %1595 = vmatprep.subr.mxu0 %v636_v33  ;;  %1630 = vmatprep.subr.mxu1 %v668_v34  ;;  %v615_v31 = vld [vmem:[%s3391_s1 + $0x20] sm:$0xff]  ;;  %v742_v34 = vld [vmem:[%s3394_s4 + $0x3d8] sm:$0xff] }
 0x168   :  { %1596 = vmatpush3.msra.mxu0 %v620_v35  ;;  %1631 = vmatpush3.msra.mxu1 %v652_v36  ;;  %v743_v33 = vld [vmem:[%s3394_s4 + $0x3e0] sm:$0xff]  ;;  %v741_v35 = vld [vmem:[%s3394_s4 + $0x3d0] sm:$0xff]  ;;  %v740_v36 = vld [vmem:[%s3394_s4 + $0x3c8] sm:$0xff] }
 0x169   :  { %1597 = vmatprep.subr.mxu0 %v635_v37  ;;  %1632 = vmatprep.subr.mxu1 %v667_v38  ;;  %v739_v37 = vld [vmem:[%s3394_s4 + $0x3c0] sm:$0xff]  ;;  %v738_v38 = vld [vmem:[%s3394_s4 + $0x3b8] sm:$0xff] }
 0x16a   :  { %1598 = vmatpush3.msra.mxu0 %v619_v39  ;;  %1220 = vmatprep.mubr.f32.mxu0 %v612_v40  ;;  %v737_v39 = vld [vmem:[%s3394_s4 + $0x3b0] sm:$0xff]  ;;  %v736_v40 = vld [vmem:[%s3394_s4 + $0x3a8] sm:$0xff] }
 0x16b   :  { %1633 = vmatpush3.msra.mxu1 %v651_v63  ;;  %1290 = vmatprep.mubr.f32.mxu1 %v614_v41  ;;  %v735_v63 = vld [vmem:[%s3394_s4 + $0x3a0] sm:$0xff]  ;;  %v734_v41 = vld [vmem:[%s3394_s4 + $0x398] sm:$0xff] }
 0x16c   :  { %1221 = vmatmul.mubr.f32.vlgmr.msra.gmra.mxu0 %v611_v42  ;;  %1291 = vmatmul.mubr.f32.vlgmr.msra.gmra.mxu1 %v613_v43  ;;  %v733_v42 = vld [vmem:[%s3394_s4 + $0x390] sm:$0xff]  ;;  %v732_v43 = vld [vmem:[%s3394_s4 + $0x388] sm:$0xff] }
 0x16d   :  { %1637 = vmatprep.subr.mxu0 %v714_v44  ;;  %1366 = vmatprep.subr.mxu1 %v1696_v18  ;;  %v731_v44 = vld [vmem:[%s3394_s4 + $0x380] sm:$0xff] }
 0x16e   :  { %1638 = vmatpush3.msra.mxu0 %v698_v45  ;;  %1367 = vmatpush1.msra.mxu1 %v730_v46  ;;  %v617_v45 = vld [vmem:[%s3391_s1 + $0x30] sm:$0xff] }
 0x16f   :  { %1639 = vmatprep.subr.mxu0 %v713_v47  ;;  %1368 = vmatprep.subr.mxu1 %v1696_v18 }
 0x170   :  { %1640 = vmatpush3.msra.mxu0 %v697_v48  ;;  %1369 = vmatpush1.msra.mxu1 %v729_v49 }
 0x171   :  { %1641 = vmatprep.subr.mxu0 %v712_v50  ;;  %1370 = vmatprep.subr.mxu1 %v1696_v18 }
 0x172   :  { %1642 = vmatpush3.msra.mxu0 %v696_v51  ;;  %1371 = vmatpush1.msra.mxu1 %v728_v52 }
 0x173   :  { %1643 = vmatprep.subr.mxu0 %v711_v53  ;;  %1372 = vmatprep.subr.mxu1 %v1696_v18 }
 0x174   :  { %1644 = vmatpush3.msra.mxu0 %v695_v54  ;;  %1373 = vmatpush1.msra.mxu1 %v727_v55 }
 0x175   :  { %1645 = vmatprep.subr.mxu0 %v710_v56  ;;  %1374 = vmatprep.subr.mxu1 %v1696_v18 }
 0x176   :  { %1646 = vmatpush3.msra.mxu0 %v694_v57  ;;  %1375 = vmatpush1.msra.mxu1 %v726_v58 }
 0x177   :  { %1647 = vmatprep.subr.mxu0 %v709_v59  ;;  %1376 = vmatprep.subr.mxu1 %v1696_v18 }
 0x178   :  { %1648 = vmatpush3.msra.mxu0 %v693_v60  ;;  %1377 = vmatpush1.msra.mxu1 %v725_v61 }
 0x179   :  { %1649 = vmatprep.subr.mxu0 %v708_v62  ;;  %1378 = vmatprep.subr.mxu1 %v1696_v18 }
 0x17a   :  { %1650 = vmatpush3.msra.mxu0 %v692_v0  ;;  %1379 = vmatpush1.msra.mxu1 %v724_v2 }
 0x17b   :  { %1651 = vmatprep.subr.mxu0 %v707_v3  ;;  %1380 = vmatprep.subr.mxu1 %v1696_v18 }
 0x17c   :  { %1652 = vmatpush3.msra.mxu0 %v691_v4  ;;  %1381 = vmatpush1.msra.mxu1 %v723_v5 }
 0x17d   :  { %1653 = vmatprep.subr.mxu0 %v706_v6  ;;  %1382 = vmatprep.subr.mxu1 %v1696_v18 }
 0x17e   :  { %1654 = vmatpush3.msra.mxu0 %v690_v8  ;;  %1383 = vmatpush1.msra.mxu1 %v722_v9 }
 0x17f   :  { %1655 = vmatprep.subr.mxu0 %v705_v10  ;;  %1384 = vmatprep.subr.mxu1 %v1696_v18 }
 0x180   :  { %1656 = vmatpush3.msra.mxu0 %v689_v1  ;;  %1385 = vmatpush1.msra.mxu1 %v721_v11  ;;  %v1461_v1 = vld [vmem:[%s3396_s6] ss:$0 sm:$0xff] }
 0x181   :  { %1657 = vmatprep.subr.mxu0 %v704_v12  ;;  %1386 = vmatprep.subr.mxu1 %v1696_v18 }
 0x182   :  { %1658 = vmatpush3.msra.mxu0 %v688_v13  ;;  %1387 = vmatpush1.msra.mxu1 %v720_v14 }
 0x183   :  { %1659 = vmatprep.subr.mxu0 %v703_v15  ;;  %1388 = vmatprep.subr.mxu1 %v1696_v18 }
 0x184   :  { %1660 = vmatpush3.msra.mxu0 %v687_v16  ;;  %1389 = vmatpush1.msra.mxu1 %v719_v17 }
 0x185   :  { %1661 = vmatprep.subr.mxu0 %v702_v19  ;;  %1390 = vmatprep.subr.mxu1 %v1696_v18 }
 0x186   :  { %1662 = vmatpush3.msra.mxu0 %v686_v20  ;;  %1391 = vmatpush1.msra.mxu1 %v718_v21 }
 0x187   :  { %1663 = vmatprep.subr.mxu0 %v701_v22  ;;  %1392 = vmatprep.subr.mxu1 %v1696_v18 }
 0x188   :  { %1664 = vmatpush3.msra.mxu0 %v685_v23  ;;  %1393 = vmatpush1.msra.mxu1 %v717_v24 }
 0x189   :  { %1665 = vmatprep.subr.mxu0 %v700_v25  ;;  %1394 = vmatprep.subr.mxu1 %v1696_v18 }
 0x18a   :  { %1666 = vmatpush3.msra.mxu0 %v684_v26  ;;  %1395 = vmatpush1.msra.mxu1 %v716_v27 }
 0x18b   :  { %1667 = vmatprep.subr.mxu0 %v699_v28  ;;  %1396 = vmatprep.subr.mxu1 %v1696_v18 }
 0x18c   :  { %1668 = vmatpush3.msra.mxu0 %v683_v29  ;;  %1360 = vmatprep.mubr.f32.mxu0 %v616_v7 }
 0x18d   :  { %1397 = vmatpush1.msra.mxu1 %v715_v30  ;;  %1361 = vmatmul.mubr.f32.vlgmr.msra.gmra.mxu0 %v615_v31 }
 0x18e   :  { %1404 = vmatprep.subr.mxu1 %v1696_v18  ;;  %1460 = vmatprep.mubr.msk.f32.mxu1 %vm869_vm0, %v618_v32 }
 0x18f   :  { %1405 = vmatpush2.msra.mxu1 %v743_v33 }
 0x190   :  { %1406 = vmatprep.subr.mxu1 %v1696_v18 }
 0x191   :  { %1407 = vmatpush2.msra.mxu1 %v742_v34 }
 0x192   :  { %1408 = vmatprep.subr.mxu1 %v1696_v18 }
 0x193   :  { %1409 = vmatpush2.msra.mxu1 %v741_v35 }
 0x194   :  { %1410 = vmatprep.subr.mxu1 %v1696_v18 }
 0x195   :  { %1411 = vmatpush2.msra.mxu1 %v740_v36 }
 0x196   :  { %1412 = vmatprep.subr.mxu1 %v1696_v18 }
 0x197   :  { %1413 = vmatpush2.msra.mxu1 %v739_v37 }
 0x198   :  { %1414 = vmatprep.subr.mxu1 %v1696_v18 }
 0x199   :  { %1415 = vmatpush2.msra.mxu1 %v738_v38 }
 0x19a   :  { %1416 = vmatprep.subr.mxu1 %v1696_v18 }
 0x19b   :  { %1417 = vmatpush2.msra.mxu1 %v737_v39 }
 0x19c   :  { %1418 = vmatprep.subr.mxu1 %v1696_v18 }
 0x19d   :  { %1419 = vmatpush2.msra.mxu1 %v736_v40 }
 0x19e   :  { %1420 = vmatprep.subr.mxu1 %v1696_v18 }
 0x19f   :  { %1421 = vmatpush2.msra.mxu1 %v735_v63 }
 0x1a0   :  { %1422 = vmatprep.subr.mxu1 %v1696_v18 }
 0x1a1   :  { %1423 = vmatpush2.msra.mxu1 %v734_v41 }
 0x1a2   :  { %1424 = vmatprep.subr.mxu1 %v1696_v18 }
 0x1a3   :  { %1425 = vmatpush2.msra.mxu1 %v733_v42 }
 0x1a4   :  { %1426 = vmatprep.subr.mxu1 %v1696_v18 }
 0x1a5   :  { %1427 = vmatpush2.msra.mxu1 %v732_v43 }
 0x1a6   :  { %1428 = vmatprep.subr.mxu1 %v1696_v18 }
 0x1a7   :  { %1429 = vmatpush2.msra.mxu1 %v731_v44 }
 0x1a8   :  { %1431 = vmatmul.mubr.f32.vlgmr.msra.gmra.mxu1 %v617_v45 }
 0x1c9   :  { %v1494_v48 = vpop.f32.mrf.mxu0 }
 0x1cb   :  { %v1495_v49 = vpop.f32.mrf.mxu0 }
 0x1cc   :  { %v1496_v56 = vadd.f32 %v1495_v49, %v1494_v48 }
 0x1e9   :  { %v1529_v50 = vpop.f32.mrf.mxu0 }
 0x1eb   :  { %v1530_v51 = vpop.f32.mrf.mxu0 }
 0x1ec   :  { %v1531_v54 = vadd.f32 %v1530_v51, %v1529_v50 }
 0x1ee   :  { %v1010_v58 = vadd.f32 %v1531_v54, %v1496_v56 }
 0x20b   :  { %v1149_v46 = vpop.f32.mrf.mxu1  ;;  %v1564_v52 = vpop.f32.mrf.mxu0 }
 0x20d   :  { %v1151_v47 = vpop.f32.mrf.mxu1  ;;  %v1565_v53 = vpop.f32.mrf.mxu0 }
 0x20e   :  { %v1566_v57 = vadd.f32 %v1565_v53, %v1564_v52 }
 0x210   :  { %v1080_v60 = vadd.f32 %v1566_v57, %v1010_v58 }
 0x212   :  { %v1150_v0 = vadd.f32 %v1149_v46, %v1080_v60 }
 0x22c   :  { %v1599_v55 = vpop.f32.mrf.mxu0  ;;  %v1634_v61 = vpop.f32.mrf.mxu1 }
 0x22e   :  { %v1600_v59 = vpop.f32.mrf.mxu0  ;;  %v1635_v2 = vpop.f32.mrf.mxu1 }
 0x22f   :  { %v1601_v18 = vadd.f32 %v1600_v59, %v1599_v55  ;;  %v1636_v5 = vadd.f32 %v1635_v2, %v1634_v61 }
 0x231   :  { %v1223_v4 = vadd.f32 %v1601_v18, %v1150_v0 }
 0x233   :  { %v1293_v8 = vadd.f32 %v1636_v5, %v1223_v4 }
 0x24d   :  { %v1669_v62 = vpop.f32.mrf.mxu0 }
 0x24f   :  { %v1670_v3 = vpop.f32.mrf.mxu0 }
 0x250   :  { %v1671_v6 = vadd.f32 %v1670_v3, %v1669_v62 }
 0x252   :  { %v1363_v9 = vadd.f32 %v1671_v6, %v1293_v8 }
 0x268   :  { %v1432_v10 = vpop.f32.mrf.mxu1 }
 0x269   :  { %v1433_v11 = vadd.f32 %v1432_v10, %v1363_v9 }
 0x26a   :  { %v1434_v12 = vpop.f32.mrf.mxu1 }
 0x26b   :  { %v1443_v13 = vadd.f32 %v1461_v1, %v1433_v11 }
 0x26d   :  { %1444 = vst [vmem:[#allocation2] sm:$0xff] %v1443_v13 }
 0x26e   :  { %1685 = shalt.err (!%p1682_p4)
}
 0x26f   :  { %1454 = dma.vmem_to_hbm [thread:$0]  %s1452_s17, 128, %s3397_s7, [#allocation3]  }
 0x270   :  { %1694 = dma.done.wait [#allocation3], 128  }
 0x271   :  { %1695 = vsyncadd [#allocation3], 4294967168 }
 0x272   :  { %1458 = vsyncpa [#allocation3], 1 }

</bundles_post_ra>
